<compile_context>
chip_gen: v7x
topology: tpu7x:2x2x1
jax: 0.10.0
libtpu: 0.0.40
codegen_flags: <defaults>
</compile_context>

<pallas_src>
import functools

import jax
import jax.numpy as jnp
from jax import lax
from jax.experimental import pallas as pl
from jax.experimental.pallas import tpu as pltpu

LN_EPS = 1e-5          # PyTorch TransformerEncoderLayer default layer_norm_eps
MASK_BIAS = -1e30      # additive bias; avoids NaN on fully-masked rows
                       # (diverges from torch's -inf only for fully-masked rows)

# row indices inside the per-layer vector slab (L, 9, hidden)
_BQ, _BK, _BV, _BO, _G1, _BETA1, _B2, _G2, _BETA2 = range(9)
# row indices inside the global vector slab (2, hidden)
_BE, _BH1 = 0, 1


def _layernorm(x, gamma, beta):
    mu = jnp.mean(x, axis=-1, keepdims=True)
    var = jnp.mean((x - mu) ** 2, axis=-1, keepdims=True)
    return (x - mu) * lax.rsqrt(var + LN_EPS) * gamma + beta


def gat_v3_kernel(
    x_ref, adj_ref,
    we_ref, wqkv_ref, wo_ref, w1_ref, w2_ref, wh1_ref, wh2_ref,
    b1_ref, lvec_ref, gvec_ref, bh2_ref,
    out_ref,
    *, heads, num_layers,
):
    f32 = jnp.float32
    bf16 = jnp.bfloat16

    bblk, n, in_feat = x_ref.shape
    hidden = we_ref.shape[1]
    dh = hidden // heads
    rows = bblk * n

    be = gvec_ref[_BE:_BE + 1, :]          # (1, hidden)
    bh1 = gvec_ref[_BH1:_BH1 + 1, :]       # (1, hidden)

    # ---- embed layer (batch-packed, full-width matmul) ----------------------
    x2d = x_ref[...].reshape(rows, in_feat).astype(bf16)
    h = jnp.dot(x2d, we_ref[...], preferred_element_type=f32) + be

    # ---- additive attention-mask bias, computed once per grid step ----------
    # PyTorch: mask = (1 - (adj + I)).bool()  -> disallowed where adj + I != 1
    adj_i = adj_ref[...].astype(jnp.int32)                      # int8 -> int32
    r = lax.broadcasted_iota(jnp.int32, (n, n), 0)
    c = lax.broadcasted_iota(jnp.int32, (n, n), 1)
    eye = (r == c).astype(jnp.int32)
    disallowed = (adj_i + eye[None]) != 1
    bias = jnp.where(disallowed, f32(MASK_BIAS), f32(0.0))      # (bblk, n, n)
    # heads folded onto the batch axis -> repeat bias per head (head-major)
    bias_bh = jnp.concatenate([bias] * heads, axis=0) if heads > 1 else bias

    # ---- transformer encoder layers (post-norm, relu FFN, dropout=0) --------
    for l in range(num_layers):
        lv = lambda i, _l=l: lvec_ref[_l, i:i + 1, :]           # (1, hidden)
        hb = h.astype(bf16)

        # fused Q|K|V projection: one (rows, hidden) @ (hidden, 3*hidden)
        qkv = jnp.dot(hb, wqkv_ref[l], preferred_element_type=f32)
        q = qkv[:, 0 * hidden:1 * hidden] + lv(_BQ)    # scale folded into Wq/bq
        k = qkv[:, 1 * hidden:2 * hidden] + lv(_BK)
        v = qkv[:, 2 * hidden:3 * hidden] + lv(_BV)

        q3 = q.reshape(bblk, n, hidden).astype(bf16)
        k3 = k.reshape(bblk, n, hidden).astype(bf16)
        v3 = v.reshape(bblk, n, hidden).astype(bf16)

        # fold heads into the (leading) batch axis: (heads*bblk, n, dh)
        if heads > 1:
            q_bh = jnp.concatenate(
                [q3[:, :, i * dh:(i + 1) * dh] for i in range(heads)], axis=0)
            k_bh = jnp.concatenate(
                [k3[:, :, i * dh:(i + 1) * dh] for i in range(heads)], axis=0)
            v_bh = jnp.concatenate(
                [v3[:, :, i * dh:(i + 1) * dh] for i in range(heads)], axis=0)
        else:
            q_bh, k_bh, v_bh = q3, k3, v3

        # single batched score einsum + softmax + context einsum for ALL heads
        s = jnp.einsum("bqd,bkd->bqk", q_bh, k_bh,
                       preferred_element_type=f32) + bias_bh
        m = jnp.max(s, axis=-1, keepdims=True)
        p = jnp.exp(s - m)
        inv = pl.reciprocal(jnp.sum(p, axis=-1, keepdims=True), approx=True)
        p = (p * inv).astype(bf16)
        ctx_bh = jnp.einsum("bqk,bkd->bqd", p, v_bh,
                            preferred_element_type=f32)        # (heads*bblk,n,dh)

        if heads > 1:
            ctx = jnp.concatenate(
                [ctx_bh[i * bblk:(i + 1) * bblk] for i in range(heads)], axis=-1)
        else:
            ctx = ctx_bh
        ctx2 = ctx.reshape(rows, hidden).astype(bf16)
        attn = jnp.dot(ctx2, wo_ref[l], preferred_element_type=f32) + lv(_BO)

        y = _layernorm(h + attn, lv(_G1), lv(_BETA1))
        ff = jnp.maximum(
            jnp.dot(y.astype(bf16), w1_ref[l], preferred_element_type=f32)
            + b1_ref[l], 0.0)
        ff = jnp.dot(ff.astype(bf16), w2_ref[l], preferred_element_type=f32) + lv(_B2)
        h = _layernorm(y + ff, lv(_G2), lv(_BETA2))

    # ---- output MLP: Linear -> ReLU -> Linear --------------------------------
    o = jnp.maximum(
        jnp.dot(h.astype(bf16), wh1_ref[...], preferred_element_type=f32) + bh1,
        0.0)
    o = jnp.dot(o.astype(bf16), wh2_ref[...], preferred_element_type=f32) + bh2_ref[...]
    # lane-dense store: (rows, out) -> (1, bblk, n*out)
    out_ref[...] = o.reshape(out_ref.shape).astype(out_ref.dtype)


def _largest_divisor_leq(x, cap):
    cap = max(min(x, cap), 1)
    for d in range(cap, 0, -1):
        if x % d == 0:
            return d
    return 1


def _choose_b_block(bs, n, input_size, out_size, *, target_rows=256,
                    min_grid_steps=2, stream_budget_bytes=24 << 20):
    """Pick b_block: keep >=2 grid steps (v7x 2-TC split) and fill rows toward
    the MXU height, bounded by a budget for the double-buffered streamed blocks."""
    cap_grid = bs // min_grid_steps if bs >= min_grid_steps else bs
    cap_rows = max(target_rows // n, 1)
    b = _largest_divisor_leq(bs, min(cap_grid, cap_rows))

    def stream_bytes(bb):
        # x (f32) + adj (int8) + out (f32), double-buffered
        return 2 * bb * n * (input_size * 4 + n * 1 + out_size * 4)

    while b > 1 and stream_bytes(b) > stream_budget_bytes:
        b = _largest_divisor_leq(bs, b - 1)
    return b


def _vmem_limit_bytes(stream_block_bytes, weight_bytes):
    try:
        phys = int(pltpu.get_tpu_info().vmem_capacity_bytes)
    except Exception:
        phys = 128 * 2 ** 20
    cap = max(phys - (16 << 20), 32 << 20)          # headroom for compiler scratch
    need = 2 * stream_block_bytes + 2 * weight_bytes + (8 << 20)
    return int(min(cap, max(need, 32 << 20)))


def prepare_params(params, *, heads):
    """One-time (off the hot path) packing: bf16 weight cast, QKV fusion,
    1/sqrt(dh) fold, tiny-vector slab packing."""
    bf16 = jnp.bfloat16
    hidden = params["We"].shape[1]
    assert hidden % heads == 0
    dh = hidden // heads
    scale = jnp.float32(1.0 / (dh ** 0.5))

    wq = params["Wq"] * scale
    bq = params["bq"] * scale
    wqkv = jnp.concatenate([wq, params["Wk"], params["Wv"]], axis=-1).astype(bf16)
    lvec = jnp.concatenate(
        [bq, params["bk"], params["bv"], params["bo"],
         params["g1"], params["beta1"], params["b2"],
         params["g2"], params["beta2"]], axis=1).astype(jnp.float32)     # (L,9,H)
    gvec = jnp.concatenate([params["be"], params["bh1"]], axis=0).astype(jnp.float32)

    return dict(
        We=params["We"].astype(bf16),
        Wqkv=wqkv,
        Wo=params["Wo"].astype(bf16),
        W1=params["W1"].astype(bf16),
        W2=params["W2"].astype(bf16),
        Wh1=params["Wh1"].astype(bf16),
        Wh2=params["Wh2"].astype(bf16),
        b1=params["b1"].astype(jnp.float32),
        lvec=lvec,
        gvec=gvec,
        bh2=params["bh2"].astype(jnp.float32),
    )


def gat_v3_forward(x, adj, prepared, *, heads, num_layers, b_block=None):
    bs, n, input_size = x.shape
    hidden = prepared["We"].shape[1]
    out_size = prepared["Wh2"].shape[1]

    if b_block is None:
        b_block = _choose_b_block(bs, n, input_size, out_size)
    assert bs % b_block == 0
    grid_steps = bs // b_block

    x_op = x.astype(jnp.float32)
    adj_op = adj.astype(jnp.int8)          # adjacency assumed {0, 1}

    weight_ops = [
        prepared["We"], prepared["Wqkv"], prepared["Wo"], prepared["W1"],
        prepared["W2"], prepared["Wh1"], prepared["Wh2"],
        prepared["b1"], prepared["lvec"], prepared["gvec"], prepared["bh2"],
    ]

    stream_block_bytes = b_block * n * (input_size * 4 + n * 1 + out_size * 4)
    weight_bytes = sum(int(a.size) * a.dtype.itemsize for a in weight_ops)
    vmem_limit = _vmem_limit_bytes(stream_block_bytes, weight_bytes)

    kernel = functools.partial(gat_v3_kernel, heads=heads, num_layers=num_layers)
    out_shape = jax.ShapeDtypeStruct((grid_steps, b_block, n * out_size), jnp.float32)
    out_spec = pl.BlockSpec((1, b_block, n * out_size), lambda b: (b, 0, 0))

    def _const_spec(arr, single_buffer):
        nd = arr.ndim
        idx = lambda b, _nd=nd: (0,) * _nd
        if single_buffer and hasattr(pl, "Buffered"):
            # constant index_map across the grid -> never re-fetched; 1 buffer
            return pl.BlockSpec(arr.shape, idx, pipeline_mode=pl.Buffered(1))
        return pl.BlockSpec(arr.shape, idx)

    def _run(single_buffer):
        in_specs = [
            pl.BlockSpec((b_block, n, input_size), lambda b: (b, 0, 0)),
            pl.BlockSpec((b_block, n, n), lambda b: (b, 0, 0)),
        ] + [_const_spec(a, single_buffer) for a in weight_ops]
        return pl.pallas_call(
            kernel,
            out_shape=out_shape,
            grid=(grid_steps,),
            in_specs=in_specs,
            out_specs=out_spec,
            compiler_params=pltpu.CompilerParams(
                dimension_semantics=("parallel",),
                vmem_limit_bytes=vmem_limit,
            ),
        )(x_op, adj_op, *weight_ops)

    try:
        out = _run(True)
    except Exception:
        out = _run(False)      # fall back to default double buffering

    return out.reshape(bs, n, out_size)


def init_params(key, input_size, hidden, num_layers, output_size):
    L = num_layers
    ks = jax.random.split(key, 18)

    def nrm(k, shape, scale=0.1):
        return (scale * jax.random.normal(k, shape)).astype(jnp.float32)

    return dict(
        We=nrm(ks[0], (input_size, hidden)), be=nrm(ks[1], (1, hidden)),
        Wq=nrm(ks[2], (L, hidden, hidden)), bq=nrm(ks[3], (L, 1, hidden)),
        Wk=nrm(ks[4], (L, hidden, hidden)), bk=nrm(ks[5], (L, 1, hidden)),
        Wv=nrm(ks[6], (L, hidden, hidden)), bv=nrm(ks[7], (L, 1, hidden)),
        Wo=nrm(ks[8], (L, hidden, hidden)), bo=nrm(ks[9], (L, 1, hidden)),
        g1=jnp.ones((L, 1, hidden), jnp.float32),
        beta1=jnp.zeros((L, 1, hidden), jnp.float32),
        W1=nrm(ks[10], (L, hidden, 4 * hidden)), b1=nrm(ks[11], (L, 1, 4 * hidden)),
        W2=nrm(ks[12], (L, 4 * hidden, hidden)), b2=nrm(ks[13], (L, 1, hidden)),
        g2=jnp.ones((L, 1, hidden), jnp.float32),
        beta2=jnp.zeros((L, 1, hidden), jnp.float32),
        Wh1=nrm(ks[14], (hidden, hidden)), bh1=nrm(ks[15], (1, hidden)),
        Wh2=nrm(ks[16], (hidden, output_size)), bh2=nrm(ks[17], (1, output_size)),
    )


def reference_forward(x, adj, p, *, heads, num_layers):
    """Pure-JAX f32 mirror of the PyTorch forward (for validation)."""
    bs, n, _ = x.shape
    hidden = p["We"].shape[1]
    dh = hidden // heads
    h = x @ p["We"] + p["be"]
    eye = jnp.eye(n, dtype=x.dtype)
    disallowed = (1.0 - (adj + eye[None])) != 0.0
    scale = 1.0 / jnp.sqrt(jnp.float32(dh))

    def ln(z, g, b):
        mu = jnp.mean(z, -1, keepdims=True)
        var = jnp.mean((z - mu) ** 2, -1, keepdims=True)
        return (z - mu) / jnp.sqrt(var + LN_EPS) * g + b

    for l in range(num_layers):
        q = (h @ p["Wq"][l] + p["bq"][l]).reshape(bs, n, heads, dh).transpose(0, 2, 1, 3)
        k = (h @ p["Wk"][l] + p["bk"][l]).reshape(bs, n, heads, dh).transpose(0, 2, 1, 3)
        v = (h @ p["Wv"][l] + p["bv"][l]).reshape(bs, n, heads, dh).transpose(0, 2, 1, 3)
        s = jnp.einsum("bhqd,bhkd->bhqk", q, k) * scale
        s = jnp.where(disallowed[:, None], -jnp.inf, s)
        a = jax.nn.softmax(s, axis=-1)
        ctx = jnp.einsum("bhqk,bhkd->bhqd", a, v).transpose(0, 2, 1, 3).reshape(bs, n, hidden)
        attn_out = ctx @ p["Wo"][l] + p["bo"][l]
        y = ln(h + attn_out, p["g1"][l], p["beta1"][l])
        ff = jnp.maximum(y @ p["W1"][l] + p["b1"][l], 0.0) @ p["W2"][l] + p["b2"][l]
        h = ln(y + ff, p["g2"][l], p["beta2"][l])

    o = jnp.maximum(h @ p["Wh1"] + p["bh1"], 0.0) @ p["Wh2"] + p["bh2"]
    return o


if __name__ == "__main__":
    bs, n, input_size = 2, 8, 16
    hidden, heads, num_layers, output_size = 32, 2, 1, 1

    key = jax.random.PRNGKey(0)
    kx, kadj, kp = jax.random.split(key, 3)
    x = jax.random.normal(kx, (bs, n, input_size), jnp.float32)
    adj = (jax.random.uniform(kadj, (bs, n, n)) < 0.5).astype(jnp.float32)
    # zero diagonal so (adj + I) == 1 on the diagonal -> self edge stays allowed
    # (mirrors the module's `(1 - (adj + I)).bool()` mask quirk safely)
    adj = adj * (1.0 - jnp.eye(n, dtype=jnp.float32))[None]

    params = init_params(kp, input_size, hidden, num_layers, output_size)
    prepared = prepare_params(params, heads=heads)   # bf16 cast / packing ONCE

    out = gat_v3_forward(x, adj, prepared, heads=heads, num_layers=num_layers)
    out = jax.block_until_ready(out)

    ref = reference_forward(x, adj, params, heads=heads, num_layers=num_layers)
    assert out.shape == (bs, n, output_size)
    max_err = float(jnp.max(jnp.abs(out - ref)))
    # bf16 matmul inputs (f32 accumulation) + approx reciprocal vs pure-f32 ref
    assert jnp.allclose(out, ref, atol=5e-2, rtol=5e-2), max_err
    print("KERNEL_OK")
</pallas_src>

<mosaic_0001>
module attributes {stable_mosaic.version = 11 : i64} {
  func.func @gat_v3_kernel(%arg0: i32, %arg1: memref<1x8x16xf32, #tpu.memory_space<vmem>>, %arg2: memref<1x8x8xi8, #tpu.memory_space<vmem>>, %arg3: memref<16x32xbf16, #tpu.memory_space<vmem>>, %arg4: memref<1x32x96xbf16, #tpu.memory_space<vmem>>, %arg5: memref<1x32x32xbf16, #tpu.memory_space<vmem>>, %arg6: memref<1x32x128xbf16, #tpu.memory_space<vmem>>, %arg7: memref<1x128x32xbf16, #tpu.memory_space<vmem>>, %arg8: memref<32x32xbf16, #tpu.memory_space<vmem>>, %arg9: memref<32x1xbf16, #tpu.memory_space<vmem>>, %arg10: memref<1x1x128xf32, #tpu.memory_space<vmem>>, %arg11: memref<1x9x32xf32, #tpu.memory_space<vmem>>, %arg12: memref<2x32xf32, #tpu.memory_space<vmem>>, %arg13: memref<1x1xf32, #tpu.memory_space<vmem>>, %arg14: memref<1x1x8xf32, #tpu.memory_space<vmem>>) attributes {dimension_semantics = [#tpu.dimension_semantics<parallel>], iteration_bounds = array<i64: 2>, scalar_prefetch = 0 : i64, scratch_operands = 0 : i64, tpu.core_type = #tpu.core_type<tc>, window_params = [{transform_indices = @transform_0, window_bounds = array<i64: 1, 8, 16>}, {transform_indices = @transform_1, window_bounds = array<i64: 1, 8, 8>}, {pipeline_mode = #tpu.pipeline_mode<synchronous>, transform_indices = @transform_2, window_bounds = array<i64: 16, 32>}, {pipeline_mode = #tpu.pipeline_mode<synchronous>, transform_indices = @transform_3, window_bounds = array<i64: 1, 32, 96>}, {pipeline_mode = #tpu.pipeline_mode<synchronous>, transform_indices = @transform_4, window_bounds = array<i64: 1, 32, 32>}, {pipeline_mode = #tpu.pipeline_mode<synchronous>, transform_indices = @transform_5, window_bounds = array<i64: 1, 32, 128>}, {pipeline_mode = #tpu.pipeline_mode<synchronous>, transform_indices = @transform_6, window_bounds = array<i64: 1, 128, 32>}, {pipeline_mode = #tpu.pipeline_mode<synchronous>, transform_indices = @transform_7, window_bounds = array<i64: 32, 32>}, {pipeline_mode = #tpu.pipeline_mode<synchronous>, transform_indices = @transform_8, window_bounds = array<i64: 32, 1>}, {pipeline_mode = #tpu.pipeline_mode<synchronous>, transform_indices = @transform_9, window_bounds = array<i64: 1, 1, 128>}, {pipeline_mode = #tpu.pipeline_mode<synchronous>, transform_indices = @transform_10, window_bounds = array<i64: 1, 9, 32>}, {pipeline_mode = #tpu.pipeline_mode<synchronous>, transform_indices = @transform_11, window_bounds = array<i64: 2, 32>}, {pipeline_mode = #tpu.pipeline_mode<synchronous>, transform_indices = @transform_12, window_bounds = array<i64: 1, 1>}, {transform_indices = @transform_13, window_bounds = array<i64: 1, 1, 8>}]} {
    %c0 = arith.constant 0 : index
    %c0_0 = arith.constant 0 : index
    %0 = vector.load %arg12[%c0, %c0_0] : memref<2x32xf32, #tpu.memory_space<vmem>>, vector<1x32xf32>
    %c1 = arith.constant 1 : index
    %c0_1 = arith.constant 0 : index
    %1 = vector.load %arg12[%c1, %c0_1] : memref<2x32xf32, #tpu.memory_space<vmem>>, vector<1x32xf32>
    %c0_2 = arith.constant 0 : index
    %c0_3 = arith.constant 0 : index
    %c0_4 = arith.constant 0 : index
    %2 = vector.load %arg1[%c0_2, %c0_3, %c0_4] : memref<1x8x16xf32, #tpu.memory_space<vmem>>, vector<1x8x16xf32>
    %3 = vector.shape_cast %2 : vector<1x8x16xf32> to vector<8x16xf32>
    %4 = arith.truncf %3 : vector<8x16xf32> to vector<8x16xbf16>
    %c0_5 = arith.constant 0 : index
    %c0_6 = arith.constant 0 : index
    %5 = vector.load %arg3[%c0_5, %c0_6] : memref<16x32xbf16, #tpu.memory_space<vmem>>, vector<16x32xbf16>
    %cst = arith.constant dense<0.000000e+00> : vector<8x32xf32>
    %6 = tpu.matmul %4, %5, %cst {dimension_numbers = #tpu.dot_dimension_numbers<[1], [0], [0], [1], [0, 0, 1, 1], [], []>} : vector<8x16xbf16>, vector<16x32xbf16>, vector<8x32xf32> -> vector<8x32xf32>
    %7 = vector.broadcast %0 : vector<1x32xf32> to vector<8x32xf32>
    %8 = arith.addf %6, %7 : vector<8x32xf32>
    %c0_7 = arith.constant 0 : index
    %c0_8 = arith.constant 0 : index
    %c0_9 = arith.constant 0 : index
    %9 = vector.load %arg2[%c0_7, %c0_8, %c0_9] : memref<1x8x8xi8, #tpu.memory_space<vmem>>, vector<1x8x8xi8>
    %10 = arith.extsi %9 : vector<1x8x8xi8> to vector<1x8x8xi32>
    %11 = tpu.iota {dimensions = array<i32: 0>} : vector<8x8xi32>
    %12 = tpu.iota {dimensions = array<i32: 1>} : vector<8x8xi32>
    %13 = arith.cmpi eq, %11, %12 : vector<8x8xi32>
    %14 = arith.extui %13 : vector<8x8xi1> to vector<8x8xi32>
    %15 = vector.shape_cast %14 : vector<8x8xi32> to vector<1x8x8xi32>
    %16 = arith.addi %10, %15 : vector<1x8x8xi32>
    %c1_i32 = arith.constant 1 : i32
    %17 = vector.broadcast %c1_i32 : i32 to vector<1x8x8xi32>
    %18 = arith.cmpi ne, %16, %17 : vector<1x8x8xi32>
    %cst_10 = arith.constant -1.000000e+30 : f32
    %cst_11 = arith.constant 0.000000e+00 : f32
    %19 = vector.broadcast %cst_10 : f32 to vector<1x8x8xf32>
    %20 = vector.broadcast %cst_11 : f32 to vector<1x8x8xf32>
    %21 = arith.select %18, %19, %20 : vector<1x8x8xi1>, vector<1x8x8xf32>
    %22 = tpu.concatenate %21, %21 in 0 : vector<1x8x8xf32>, vector<1x8x8xf32> -> vector<2x8x8xf32>
    %23 = arith.truncf %8 : vector<8x32xf32> to vector<8x32xbf16>
    %c0_12 = arith.constant 0 : index
    %c0_13 = arith.constant 0 : index
    %c0_14 = arith.constant 0 : index
    %24 = vector.load %arg4[%c0_12, %c0_13, %c0_14] : memref<1x32x96xbf16, #tpu.memory_space<vmem>>, vector<1x32x96xbf16>
    %25 = vector.shape_cast %24 : vector<1x32x96xbf16> to vector<32x96xbf16>
    %cst_15 = arith.constant dense<0.000000e+00> : vector<8x96xf32>
    %26 = tpu.matmul %23, %25, %cst_15 {dimension_numbers = #tpu.dot_dimension_numbers<[1], [0], [0], [1], [0, 0, 1, 1], [], []>} : vector<8x32xbf16>, vector<32x96xbf16>, vector<8x96xf32> -> vector<8x96xf32>
    %27 = vector.extract_strided_slice %26 {offsets = [0, 0], sizes = [8, 32], strides = [1, 1]} : vector<8x96xf32> to vector<8x32xf32>
    %c0_16 = arith.constant 0 : index
    %c0_17 = arith.constant 0 : index
    %c0_18 = arith.constant 0 : index
    %28 = vector.load %arg11[%c0_16, %c0_17, %c0_18] : memref<1x9x32xf32, #tpu.memory_space<vmem>>, vector<1x1x32xf32>
    %29 = vector.shape_cast %28 : vector<1x1x32xf32> to vector<1x32xf32>
    %30 = vector.broadcast %29 : vector<1x32xf32> to vector<8x32xf32>
    %31 = arith.addf %27, %30 : vector<8x32xf32>
    %32 = vector.extract_strided_slice %26 {offsets = [0, 32], sizes = [8, 32], strides = [1, 1]} : vector<8x96xf32> to vector<8x32xf32>
    %c0_19 = arith.constant 0 : index
    %c1_20 = arith.constant 1 : index
    %c0_21 = arith.constant 0 : index
    %33 = vector.load %arg11[%c0_19, %c1_20, %c0_21] : memref<1x9x32xf32, #tpu.memory_space<vmem>>, vector<1x1x32xf32>
    %34 = vector.shape_cast %33 : vector<1x1x32xf32> to vector<1x32xf32>
    %35 = vector.broadcast %34 : vector<1x32xf32> to vector<8x32xf32>
    %36 = arith.addf %32, %35 : vector<8x32xf32>
    %37 = vector.extract_strided_slice %26 {offsets = [0, 64], sizes = [8, 32], strides = [1, 1]} : vector<8x96xf32> to vector<8x32xf32>
    %c0_22 = arith.constant 0 : index
    %c2 = arith.constant 2 : index
    %c0_23 = arith.constant 0 : index
    %38 = vector.load %arg11[%c0_22, %c2, %c0_23] : memref<1x9x32xf32, #tpu.memory_space<vmem>>, vector<1x1x32xf32>
    %39 = vector.shape_cast %38 : vector<1x1x32xf32> to vector<1x32xf32>
    %40 = vector.broadcast %39 : vector<1x32xf32> to vector<8x32xf32>
    %41 = arith.addf %37, %40 : vector<8x32xf32>
    %42 = vector.shape_cast %31 : vector<8x32xf32> to vector<1x8x32xf32>
    %43 = arith.truncf %42 : vector<1x8x32xf32> to vector<1x8x32xbf16>
    %44 = vector.shape_cast %36 : vector<8x32xf32> to vector<1x8x32xf32>
    %45 = arith.truncf %44 : vector<1x8x32xf32> to vector<1x8x32xbf16>
    %46 = vector.shape_cast %41 : vector<8x32xf32> to vector<1x8x32xf32>
    %47 = arith.truncf %46 : vector<1x8x32xf32> to vector<1x8x32xbf16>
    %48 = vector.extract_strided_slice %43 {offsets = [0, 0, 0], sizes = [1, 8, 16], strides = [1, 1, 1]} : vector<1x8x32xbf16> to vector<1x8x16xbf16>
    %49 = vector.extract_strided_slice %43 {offsets = [0, 0, 16], sizes = [1, 8, 16], strides = [1, 1, 1]} : vector<1x8x32xbf16> to vector<1x8x16xbf16>
    %50 = tpu.concatenate %48, %49 in 0 : vector<1x8x16xbf16>, vector<1x8x16xbf16> -> vector<2x8x16xbf16>
    %51 = vector.extract_strided_slice %45 {offsets = [0, 0, 0], sizes = [1, 8, 16], strides = [1, 1, 1]} : vector<1x8x32xbf16> to vector<1x8x16xbf16>
    %52 = vector.extract_strided_slice %45 {offsets = [0, 0, 16], sizes = [1, 8, 16], strides = [1, 1, 1]} : vector<1x8x32xbf16> to vector<1x8x16xbf16>
    %53 = tpu.concatenate %51, %52 in 0 : vector<1x8x16xbf16>, vector<1x8x16xbf16> -> vector<2x8x16xbf16>
    %54 = vector.extract_strided_slice %47 {offsets = [0, 0, 0], sizes = [1, 8, 16], strides = [1, 1, 1]} : vector<1x8x32xbf16> to vector<1x8x16xbf16>
    %55 = vector.extract_strided_slice %47 {offsets = [0, 0, 16], sizes = [1, 8, 16], strides = [1, 1, 1]} : vector<1x8x32xbf16> to vector<1x8x16xbf16>
    %56 = tpu.concatenate %54, %55 in 0 : vector<1x8x16xbf16>, vector<1x8x16xbf16> -> vector<2x8x16xbf16>
    "tpu.trace_start"() <{level = 10 : i32, message = "bqd,bkd->bqk"}> : () -> ()
    %cst_24 = arith.constant dense<0.000000e+00> : vector<2x8x8xf32>
    %57 = tpu.matmul %50, %53, %cst_24 {dimension_numbers = #tpu.dot_dimension_numbers<[2], [2], [1], [1], [0, 0, 0, 1, 1, 1], [0], [0]>} : vector<2x8x16xbf16>, vector<2x8x16xbf16>, vector<2x8x8xf32> -> vector<2x8x8xf32>
    "tpu.trace_stop"() : () -> ()
    %58 = arith.addf %57, %22 : vector<2x8x8xf32>
    %cst_25 = arith.constant dense<0xFF800000> : vector<2x8xf32>
    %59 = vector.multi_reduction <maximumf>, %58, %cst_25 [2] : vector<2x8x8xf32> to vector<2x8xf32>
    %60 = vector.shape_cast %59 : vector<2x8xf32> to vector<2x8x1xf32>
    %61 = vector.broadcast %60 : vector<2x8x1xf32> to vector<2x8x8xf32>
    %62 = arith.subf %58, %61 : vector<2x8x8xf32>
    %63 = math.exp %62 : vector<2x8x8xf32>
    %cst_26 = arith.constant dense<0.000000e+00> : vector<2x8xf32>
    %64 = vector.multi_reduction <add>, %63, %cst_26 [2] : vector<2x8x8xf32> to vector<2x8xf32>
    %65 = vector.shape_cast %64 : vector<2x8xf32> to vector<2x8x1xf32>
    %66 = tpu.reciprocal %65 {approx = true} : vector<2x8x1xf32> -> vector<2x8x1xf32>
    %67 = vector.broadcast %66 : vector<2x8x1xf32> to vector<2x8x8xf32>
    %68 = arith.mulf %63, %67 : vector<2x8x8xf32>
    %69 = arith.truncf %68 : vector<2x8x8xf32> to vector<2x8x8xbf16>
    "tpu.trace_start"() <{level = 10 : i32, message = "bqk,bkd->bqd"}> : () -> ()
    %cst_27 = arith.constant dense<0.000000e+00> : vector<2x8x16xf32>
    %70 = tpu.matmul %69, %56, %cst_27 {dimension_numbers = #tpu.dot_dimension_numbers<[2], [1], [1], [2], [0, 0, 0, 1, 1, 2], [0], [0]>} : vector<2x8x8xbf16>, vector<2x8x16xbf16>, vector<2x8x16xf32> -> vector<2x8x16xf32>
    "tpu.trace_stop"() : () -> ()
    %71 = vector.extract_strided_slice %70 {offsets = [0, 0, 0], sizes = [1, 8, 16], strides = [1, 1, 1]} : vector<2x8x16xf32> to vector<1x8x16xf32>
    %72 = vector.extract_strided_slice %70 {offsets = [1, 0, 0], sizes = [1, 8, 16], strides = [1, 1, 1]} : vector<2x8x16xf32> to vector<1x8x16xf32>
    %73 = tpu.concatenate %71, %72 in 2 : vector<1x8x16xf32>, vector<1x8x16xf32> -> vector<1x8x32xf32>
    %74 = vector.shape_cast %73 : vector<1x8x32xf32> to vector<8x32xf32>
    %75 = arith.truncf %74 : vector<8x32xf32> to vector<8x32xbf16>
    %c0_28 = arith.constant 0 : index
    %c0_29 = arith.constant 0 : index
    %c0_30 = arith.constant 0 : index
    %76 = vector.load %arg5[%c0_28, %c0_29, %c0_30] : memref<1x32x32xbf16, #tpu.memory_space<vmem>>, vector<1x32x32xbf16>
    %77 = vector.shape_cast %76 : vector<1x32x32xbf16> to vector<32x32xbf16>
    %cst_31 = arith.constant dense<0.000000e+00> : vector<8x32xf32>
    %78 = tpu.matmul %75, %77, %cst_31 {dimension_numbers = #tpu.dot_dimension_numbers<[1], [0], [0], [1], [0, 0, 1, 1], [], []>} : vector<8x32xbf16>, vector<32x32xbf16>, vector<8x32xf32> -> vector<8x32xf32>
    %c0_32 = arith.constant 0 : index
    %c3 = arith.constant 3 : index
    %c0_33 = arith.constant 0 : index
    %79 = vector.load %arg11[%c0_32, %c3, %c0_33] : memref<1x9x32xf32, #tpu.memory_space<vmem>>, vector<1x1x32xf32>
    %80 = vector.shape_cast %79 : vector<1x1x32xf32> to vector<1x32xf32>
    %81 = vector.broadcast %80 : vector<1x32xf32> to vector<8x32xf32>
    %82 = arith.addf %78, %81 : vector<8x32xf32>
    %83 = arith.addf %8, %82 : vector<8x32xf32>
    %c0_34 = arith.constant 0 : index
    %c4 = arith.constant 4 : index
    %c0_35 = arith.constant 0 : index
    %84 = vector.load %arg11[%c0_34, %c4, %c0_35] : memref<1x9x32xf32, #tpu.memory_space<vmem>>, vector<1x1x32xf32>
    %85 = vector.shape_cast %84 : vector<1x1x32xf32> to vector<1x32xf32>
    %c0_36 = arith.constant 0 : index
    %c5 = arith.constant 5 : index
    %c0_37 = arith.constant 0 : index
    %86 = vector.load %arg11[%c0_36, %c5, %c0_37] : memref<1x9x32xf32, #tpu.memory_space<vmem>>, vector<1x1x32xf32>
    %87 = vector.shape_cast %86 : vector<1x1x32xf32> to vector<1x32xf32>
    %cst_38 = arith.constant dense<0.000000e+00> : vector<8xf32>
    %88 = vector.multi_reduction <add>, %83, %cst_38 [1] : vector<8x32xf32> to vector<8xf32>
    %89 = vector.shape_cast %88 : vector<8xf32> to vector<8x1xf32>
    %cst_39 = arith.constant 3.200000e+01 : f32
    %90 = vector.broadcast %cst_39 : f32 to vector<8x1xf32>
    %91 = arith.divf %89, %90 : vector<8x1xf32>
    %92 = vector.broadcast %91 : vector<8x1xf32> to vector<8x32xf32>
    %93 = arith.subf %83, %92 : vector<8x32xf32>
    %94 = arith.mulf %93, %93 : vector<8x32xf32>
    %cst_40 = arith.constant dense<0.000000e+00> : vector<8xf32>
    %95 = vector.multi_reduction <add>, %94, %cst_40 [1] : vector<8x32xf32> to vector<8xf32>
    %96 = vector.shape_cast %95 : vector<8xf32> to vector<8x1xf32>
    %cst_41 = arith.constant 3.200000e+01 : f32
    %97 = vector.broadcast %cst_41 : f32 to vector<8x1xf32>
    %98 = arith.divf %96, %97 : vector<8x1xf32>
    %99 = vector.broadcast %91 : vector<8x1xf32> to vector<8x32xf32>
    %100 = arith.subf %83, %99 : vector<8x32xf32>
    %cst_42 = arith.constant 9.99999974E-6 : f32
    %101 = vector.broadcast %cst_42 : f32 to vector<8x1xf32>
    %102 = arith.addf %98, %101 : vector<8x1xf32>
    %103 = math.rsqrt %102 : vector<8x1xf32>
    %104 = vector.broadcast %103 : vector<8x1xf32> to vector<8x32xf32>
    %105 = arith.mulf %100, %104 : vector<8x32xf32>
    %106 = vector.broadcast %85 : vector<1x32xf32> to vector<8x32xf32>
    %107 = arith.mulf %105, %106 : vector<8x32xf32>
    %108 = vector.broadcast %87 : vector<1x32xf32> to vector<8x32xf32>
    %109 = arith.addf %107, %108 : vector<8x32xf32>
    %110 = arith.truncf %109 : vector<8x32xf32> to vector<8x32xbf16>
    %c0_43 = arith.constant 0 : index
    %c0_44 = arith.constant 0 : index
    %c0_45 = arith.constant 0 : index
    %111 = vector.load %arg6[%c0_43, %c0_44, %c0_45] : memref<1x32x128xbf16, #tpu.memory_space<vmem>>, vector<1x32x128xbf16>
    %112 = vector.shape_cast %111 : vector<1x32x128xbf16> to vector<32x128xbf16>
    %cst_46 = arith.constant dense<0.000000e+00> : vector<8x128xf32>
    %113 = tpu.matmul %110, %112, %cst_46 {dimension_numbers = #tpu.dot_dimension_numbers<[1], [0], [0], [1], [0, 0, 1, 1], [], []>} : vector<8x32xbf16>, vector<32x128xbf16>, vector<8x128xf32> -> vector<8x128xf32>
    %c0_47 = arith.constant 0 : index
    %c0_48 = arith.constant 0 : index
    %c0_49 = arith.constant 0 : index
    %114 = vector.load %arg10[%c0_47, %c0_48, %c0_49] : memref<1x1x128xf32, #tpu.memory_space<vmem>>, vector<1x1x128xf32>
    %115 = vector.shape_cast %114 : vector<1x1x128xf32> to vector<1x128xf32>
    %116 = vector.broadcast %115 : vector<1x128xf32> to vector<8x128xf32>
    %117 = arith.addf %113, %116 : vector<8x128xf32>
    %cst_50 = arith.constant 0.000000e+00 : f32
    %118 = vector.broadcast %cst_50 : f32 to vector<8x128xf32>
    %119 = arith.maximumf %117, %118 : vector<8x128xf32>
    %120 = arith.truncf %119 : vector<8x128xf32> to vector<8x128xbf16>
    %c0_51 = arith.constant 0 : index
    %c0_52 = arith.constant 0 : index
    %c0_53 = arith.constant 0 : index
    %121 = vector.load %arg7[%c0_51, %c0_52, %c0_53] : memref<1x128x32xbf16, #tpu.memory_space<vmem>>, vector<1x128x32xbf16>
    %122 = vector.shape_cast %121 : vector<1x128x32xbf16> to vector<128x32xbf16>
    %cst_54 = arith.constant dense<0.000000e+00> : vector<8x32xf32>
    %123 = tpu.matmul %120, %122, %cst_54 {dimension_numbers = #tpu.dot_dimension_numbers<[1], [0], [0], [1], [0, 0, 1, 1], [], []>} : vector<8x128xbf16>, vector<128x32xbf16>, vector<8x32xf32> -> vector<8x32xf32>
    %c0_55 = arith.constant 0 : index
    %c6 = arith.constant 6 : index
    %c0_56 = arith.constant 0 : index
    %124 = vector.load %arg11[%c0_55, %c6, %c0_56] : memref<1x9x32xf32, #tpu.memory_space<vmem>>, vector<1x1x32xf32>
    %125 = vector.shape_cast %124 : vector<1x1x32xf32> to vector<1x32xf32>
    %126 = vector.broadcast %125 : vector<1x32xf32> to vector<8x32xf32>
    %127 = arith.addf %123, %126 : vector<8x32xf32>
    %128 = arith.addf %109, %127 : vector<8x32xf32>
    %c0_57 = arith.constant 0 : index
    %c7 = arith.constant 7 : index
    %c0_58 = arith.constant 0 : index
    %129 = vector.load %arg11[%c0_57, %c7, %c0_58] : memref<1x9x32xf32, #tpu.memory_space<vmem>>, vector<1x1x32xf32>
    %130 = vector.shape_cast %129 : vector<1x1x32xf32> to vector<1x32xf32>
    %c0_59 = arith.constant 0 : index
    %c8 = arith.constant 8 : index
    %c0_60 = arith.constant 0 : index
    %131 = vector.load %arg11[%c0_59, %c8, %c0_60] : memref<1x9x32xf32, #tpu.memory_space<vmem>>, vector<1x1x32xf32>
    %132 = vector.shape_cast %131 : vector<1x1x32xf32> to vector<1x32xf32>
    %cst_61 = arith.constant dense<0.000000e+00> : vector<8xf32>
    %133 = vector.multi_reduction <add>, %128, %cst_61 [1] : vector<8x32xf32> to vector<8xf32>
    %134 = vector.shape_cast %133 : vector<8xf32> to vector<8x1xf32>
    %cst_62 = arith.constant 3.200000e+01 : f32
    %135 = vector.broadcast %cst_62 : f32 to vector<8x1xf32>
    %136 = arith.divf %134, %135 : vector<8x1xf32>
    %137 = vector.broadcast %136 : vector<8x1xf32> to vector<8x32xf32>
    %138 = arith.subf %128, %137 : vector<8x32xf32>
    %139 = arith.mulf %138, %138 : vector<8x32xf32>
    %cst_63 = arith.constant dense<0.000000e+00> : vector<8xf32>
    %140 = vector.multi_reduction <add>, %139, %cst_63 [1] : vector<8x32xf32> to vector<8xf32>
    %141 = vector.shape_cast %140 : vector<8xf32> to vector<8x1xf32>
    %cst_64 = arith.constant 3.200000e+01 : f32
    %142 = vector.broadcast %cst_64 : f32 to vector<8x1xf32>
    %143 = arith.divf %141, %142 : vector<8x1xf32>
    %144 = vector.broadcast %136 : vector<8x1xf32> to vector<8x32xf32>
    %145 = arith.subf %128, %144 : vector<8x32xf32>
    %cst_65 = arith.constant 9.99999974E-6 : f32
    %146 = vector.broadcast %cst_65 : f32 to vector<8x1xf32>
    %147 = arith.addf %143, %146 : vector<8x1xf32>
    %148 = math.rsqrt %147 : vector<8x1xf32>
    %149 = vector.broadcast %148 : vector<8x1xf32> to vector<8x32xf32>
    %150 = arith.mulf %145, %149 : vector<8x32xf32>
    %151 = vector.broadcast %130 : vector<1x32xf32> to vector<8x32xf32>
    %152 = arith.mulf %150, %151 : vector<8x32xf32>
    %153 = vector.broadcast %132 : vector<1x32xf32> to vector<8x32xf32>
    %154 = arith.addf %152, %153 : vector<8x32xf32>
    %155 = arith.truncf %154 : vector<8x32xf32> to vector<8x32xbf16>
    %c0_66 = arith.constant 0 : index
    %c0_67 = arith.constant 0 : index
    %156 = vector.load %arg8[%c0_66, %c0_67] : memref<32x32xbf16, #tpu.memory_space<vmem>>, vector<32x32xbf16>
    %cst_68 = arith.constant dense<0.000000e+00> : vector<8x32xf32>
    %157 = tpu.matmul %155, %156, %cst_68 {dimension_numbers = #tpu.dot_dimension_numbers<[1], [0], [0], [1], [0, 0, 1, 1], [], []>} : vector<8x32xbf16>, vector<32x32xbf16>, vector<8x32xf32> -> vector<8x32xf32>
    %158 = vector.broadcast %1 : vector<1x32xf32> to vector<8x32xf32>
    %159 = arith.addf %157, %158 : vector<8x32xf32>
    %cst_69 = arith.constant 0.000000e+00 : f32
    %160 = vector.broadcast %cst_69 : f32 to vector<8x32xf32>
    %161 = arith.maximumf %159, %160 : vector<8x32xf32>
    %162 = arith.truncf %161 : vector<8x32xf32> to vector<8x32xbf16>
    %c0_70 = arith.constant 0 : index
    %c0_71 = arith.constant 0 : index
    %163 = vector.load %arg9[%c0_70, %c0_71] : memref<32x1xbf16, #tpu.memory_space<vmem>>, vector<32x1xbf16>
    %cst_72 = arith.constant dense<0.000000e+00> : vector<8x1xf32>
    %164 = tpu.matmul %162, %163, %cst_72 {dimension_numbers = #tpu.dot_dimension_numbers<[1], [0], [0], [1], [0, 0, 1, 1], [], []>} : vector<8x32xbf16>, vector<32x1xbf16>, vector<8x1xf32> -> vector<8x1xf32>
    %c0_73 = arith.constant 0 : index
    %c0_74 = arith.constant 0 : index
    %165 = vector.load %arg13[%c0_73, %c0_74] : memref<1x1xf32, #tpu.memory_space<vmem>>, vector<1x1xf32>
    %166 = vector.broadcast %165 : vector<1x1xf32> to vector<8x1xf32>
    %167 = arith.addf %164, %166 : vector<8x1xf32>
    %168 = vector.shape_cast %167 : vector<8x1xf32> to vector<1x1x8xf32>
    %c0_75 = arith.constant 0 : index
    %c0_76 = arith.constant 0 : index
    %c0_77 = arith.constant 0 : index
    %169 = vector.load %arg14[%c0_75, %c0_76, %c0_77] : memref<1x1x8xf32, #tpu.memory_space<vmem>>, vector<1x1x8xf32>
    tpu.vector_store %arg14[%c0_75, %c0_76, %c0_77], %168 {strides = array<i32>} : memref<1x1x8xf32, #tpu.memory_space<vmem>>, vector<1x1x8xf32>,
    return
  }
  func.func @transform_0(%arg0: i32) -> (i32, i32, i32) {
    %c0_i32 = arith.constant 0 : i32
    %c0_i32_0 = arith.constant 0 : i32
    %c0_i32_1 = arith.constant 0 : i32
    return %arg0, %c0_i32, %c0_i32_0 : i32, i32, i32
  }
  func.func @transform_1(%arg0: i32) -> (i32, i32, i32) {
    %c0_i32 = arith.constant 0 : i32
    %c0_i32_0 = arith.constant 0 : i32
    %c0_i32_1 = arith.constant 0 : i32
    return %arg0, %c0_i32, %c0_i32_0 : i32, i32, i32
  }
  func.func @transform_2(%arg0: i32) -> (i32, i32) {
    %c0_i32 = arith.constant 0 : i32
    %c0_i32_0 = arith.constant 0 : i32
    %c0_i32_1 = arith.constant 0 : i32
    return %c0_i32, %c0_i32_0 : i32, i32
  }
  func.func @transform_3(%arg0: i32) -> (i32, i32, i32) {
    %c0_i32 = arith.constant 0 : i32
    %c0_i32_0 = arith.constant 0 : i32
    %c0_i32_1 = arith.constant 0 : i32
    %c0_i32_2 = arith.constant 0 : i32
    return %c0_i32, %c0_i32_0, %c0_i32_1 : i32, i32, i32
  }
  func.func @transform_4(%arg0: i32) -> (i32, i32, i32) {
    %c0_i32 = arith.constant 0 : i32
    %c0_i32_0 = arith.constant 0 : i32
    %c0_i32_1 = arith.constant 0 : i32
    %c0_i32_2 = arith.constant 0 : i32
    return %c0_i32, %c0_i32_0, %c0_i32_1 : i32, i32, i32
  }
  func.func @transform_5(%arg0: i32) -> (i32, i32, i32) {
    %c0_i32 = arith.constant 0 : i32
    %c0_i32_0 = arith.constant 0 : i32
    %c0_i32_1 = arith.constant 0 : i32
    %c0_i32_2 = arith.constant 0 : i32
    return %c0_i32, %c0_i32_0, %c0_i32_1 : i32, i32, i32
  }
  func.func @transform_6(%arg0: i32) -> (i32, i32, i32) {
    %c0_i32 = arith.constant 0 : i32
    %c0_i32_0 = arith.constant 0 : i32
    %c0_i32_1 = arith.constant 0 : i32
    %c0_i32_2 = arith.constant 0 : i32
    return %c0_i32, %c0_i32_0, %c0_i32_1 : i32, i32, i32
  }
  func.func @transform_7(%arg0: i32) -> (i32, i32) {
    %c0_i32 = arith.constant 0 : i32
    %c0_i32_0 = arith.constant 0 : i32
    %c0_i32_1 = arith.constant 0 : i32
    return %c0_i32, %c0_i32_0 : i32, i32
  }
  func.func @transform_8(%arg0: i32) -> (i32, i32) {
    %c0_i32 = arith.constant 0 : i32
    %c0_i32_0 = arith.constant 0 : i32
    %c0_i32_1 = arith.constant 0 : i32
    return %c0_i32, %c0_i32_0 : i32, i32
  }
  func.func @transform_9(%arg0: i32) -> (i32, i32, i32) {
    %c0_i32 = arith.constant 0 : i32
    %c0_i32_0 = arith.constant 0 : i32
    %c0_i32_1 = arith.constant 0 : i32
    %c0_i32_2 = arith.constant 0 : i32
    return %c0_i32, %c0_i32_0, %c0_i32_1 : i32, i32, i32
  }
  func.func @transform_10(%arg0: i32) -> (i32, i32, i32) {
    %c0_i32 = arith.constant 0 : i32
    %c0_i32_0 = arith.constant 0 : i32
    %c0_i32_1 = arith.constant 0 : i32
    %c0_i32_2 = arith.constant 0 : i32
    return %c0_i32, %c0_i32_0, %c0_i32_1 : i32, i32, i32
  }
  func.func @transform_11(%arg0: i32) -> (i32, i32) {
    %c0_i32 = arith.constant 0 : i32
    %c0_i32_0 = arith.constant 0 : i32
    %c0_i32_1 = arith.constant 0 : i32
    return %c0_i32, %c0_i32_0 : i32, i32
  }
  func.func @transform_12(%arg0: i32) -> (i32, i32) {
    %c0_i32 = arith.constant 0 : i32
    %c0_i32_0 = arith.constant 0 : i32
    %c0_i32_1 = arith.constant 0 : i32
    return %c0_i32, %c0_i32_0 : i32, i32
  }
  func.func @transform_13(%arg0: i32) -> (i32, i32, i32) {
    %c0_i32 = arith.constant 0 : i32
    %c0_i32_0 = arith.constant 0 : i32
    %c0_i32_1 = arith.constant 0 : i32
    return %arg0, %c0_i32, %c0_i32_0 : i32, i32, i32
  }
}

module attributes {stable_mosaic.version = 11 : i64} {
  func.func @gat_v3_kernel(%arg0: i32, %arg1: memref<1x8x16xf32, #tpu.memory_space<vmem>>, %arg2: memref<1x8x8xi8, #tpu.memory_space<vmem>>, %arg3: memref<16x32xbf16, #tpu.memory_space<vmem>>, %arg4: memref<1x32x96xbf16, #tpu.memory_space<vmem>>, %arg5: memref<1x32x32xbf16, #tpu.memory_space<vmem>>, %arg6: memref<1x32x128xbf16, #tpu.memory_space<vmem>>, %arg7: memref<1x128x32xbf16, #tpu.memory_space<vmem>>, %arg8: memref<32x32xbf16, #tpu.memory_space<vmem>>, %arg9: memref<32x1xbf16, #tpu.memory_space<vmem>>, %arg10: memref<1x1x128xf32, #tpu.memory_space<vmem>>, %arg11: memref<1x9x32xf32, #tpu.memory_space<vmem>>, %arg12: memref<2x32xf32, #tpu.memory_space<vmem>>, %arg13: memref<1x1xf32, #tpu.memory_space<vmem>>, %arg14: memref<1x1x8xf32, #tpu.memory_space<vmem>>) attributes {dimension_semantics = [#tpu.dimension_semantics<parallel>], iteration_bounds = array<i64: 2>, scalar_prefetch = 0 : i64, scratch_operands = 0 : i64, tpu.core_type = #tpu.core_type<tc>, window_params = [{transform_indices = @transform_0, window_bounds = array<i64: 1, 8, 16>}, {transform_indices = @transform_1, window_bounds = array<i64: 1, 8, 8>}, {pipeline_mode = #tpu.pipeline_mode<synchronous>, transform_indices = @transform_2, window_bounds = array<i64: 16, 32>}, {pipeline_mode = #tpu.pipeline_mode<synchronous>, transform_indices = @transform_3, window_bounds = array<i64: 1, 32, 96>}, {pipeline_mode = #tpu.pipeline_mode<synchronous>, transform_indices = @transform_4, window_bounds = array<i64: 1, 32, 32>}, {pipeline_mode = #tpu.pipeline_mode<synchronous>, transform_indices = @transform_5, window_bounds = array<i64: 1, 32, 128>}, {pipeline_mode = #tpu.pipeline_mode<synchronous>, transform_indices = @transform_6, window_bounds = array<i64: 1, 128, 32>}, {pipeline_mode = #tpu.pipeline_mode<synchronous>, transform_indices = @transform_7, window_bounds = array<i64: 32, 32>}, {pipeline_mode = #tpu.pipeline_mode<synchronous>, transform_indices = @transform_8, window_bounds = array<i64: 32, 1>}, {pipeline_mode = #tpu.pipeline_mode<synchronous>, transform_indices = @transform_9, window_bounds = array<i64: 1, 1, 128>}, {pipeline_mode = #tpu.pipeline_mode<synchronous>, transform_indices = @transform_10, window_bounds = array<i64: 1, 9, 32>}, {pipeline_mode = #tpu.pipeline_mode<synchronous>, transform_indices = @transform_11, window_bounds = array<i64: 2, 32>}, {pipeline_mode = #tpu.pipeline_mode<synchronous>, transform_indices = @transform_12, window_bounds = array<i64: 1, 1>}, {transform_indices = @transform_13, window_bounds = array<i64: 1, 1, 8>}]} {
    %c0 = arith.constant 0 : index
    %c0_0 = arith.constant 0 : index
    %0 = vector.load %arg12[%c0, %c0_0] : memref<2x32xf32, #tpu.memory_space<vmem>>, vector<1x32xf32>
    %c1 = arith.constant 1 : index
    %c0_1 = arith.constant 0 : index
    %1 = vector.load %arg12[%c1, %c0_1] : memref<2x32xf32, #tpu.memory_space<vmem>>, vector<1x32xf32>
    %c0_2 = arith.constant 0 : index
    %c0_3 = arith.constant 0 : index
    %c0_4 = arith.constant 0 : index
    %2 = vector.load %arg1[%c0_2, %c0_3, %c0_4] : memref<1x8x16xf32, #tpu.memory_space<vmem>>, vector<1x8x16xf32>
    %3 = vector.shape_cast %2 : vector<1x8x16xf32> to vector<8x16xf32>
    %4 = arith.truncf %3 : vector<8x16xf32> to vector<8x16xbf16>
    %c0_5 = arith.constant 0 : index
    %c0_6 = arith.constant 0 : index
    %5 = vector.load %arg3[%c0_5, %c0_6] : memref<16x32xbf16, #tpu.memory_space<vmem>>, vector<16x32xbf16>
    %cst = arith.constant dense<0.000000e+00> : vector<8x32xf32>
    %6 = tpu.matmul %4, %5, %cst {dimension_numbers = #tpu.dot_dimension_numbers<[1], [0], [0], [1], [0, 0, 1, 1], [], []>} : vector<8x16xbf16>, vector<16x32xbf16>, vector<8x32xf32> -> vector<8x32xf32>
    %7 = vector.broadcast %0 : vector<1x32xf32> to vector<8x32xf32>
    %8 = arith.addf %6, %7 : vector<8x32xf32>
    %c0_7 = arith.constant 0 : index
    %c0_8 = arith.constant 0 : index
    %c0_9 = arith.constant 0 : index
    %9 = vector.load %arg2[%c0_7, %c0_8, %c0_9] : memref<1x8x8xi8, #tpu.memory_space<vmem>>, vector<1x8x8xi8>
    %10 = arith.extsi %9 : vector<1x8x8xi8> to vector<1x8x8xi32>
    %11 = tpu.iota {dimensions = array<i32: 0>} : vector<8x8xi32>
    %12 = tpu.iota {dimensions = array<i32: 1>} : vector<8x8xi32>
    %13 = arith.cmpi eq, %11, %12 : vector<8x8xi32>
    %14 = arith.extui %13 : vector<8x8xi1> to vector<8x8xi32>
    %15 = vector.shape_cast %14 : vector<8x8xi32> to vector<1x8x8xi32>
    %16 = arith.addi %10, %15 : vector<1x8x8xi32>
    %c1_i32 = arith.constant 1 : i32
    %17 = vector.broadcast %c1_i32 : i32 to vector<1x8x8xi32>
    %18 = arith.cmpi ne, %16, %17 : vector<1x8x8xi32>
    %cst_10 = arith.constant -1.000000e+30 : f32
    %cst_11 = arith.constant 0.000000e+00 : f32
    %19 = vector.broadcast %cst_10 : f32 to vector<1x8x8xf32>
    %20 = vector.broadcast %cst_11 : f32 to vector<1x8x8xf32>
    %21 = arith.select %18, %19, %20 : vector<1x8x8xi1>, vector<1x8x8xf32>
    %22 = tpu.concatenate %21, %21 in 0 : vector<1x8x8xf32>, vector<1x8x8xf32> -> vector<2x8x8xf32>
    %23 = arith.truncf %8 : vector<8x32xf32> to vector<8x32xbf16>
    %c0_12 = arith.constant 0 : index
    %c0_13 = arith.constant 0 : index
    %c0_14 = arith.constant 0 : index
    %24 = vector.load %arg4[%c0_12, %c0_13, %c0_14] : memref<1x32x96xbf16, #tpu.memory_space<vmem>>, vector<1x32x96xbf16>
    %25 = vector.shape_cast %24 : vector<1x32x96xbf16> to vector<32x96xbf16>
    %cst_15 = arith.constant dense<0.000000e+00> : vector<8x96xf32>
    %26 = tpu.matmul %23, %25, %cst_15 {dimension_numbers = #tpu.dot_dimension_numbers<[1], [0], [0], [1], [0, 0, 1, 1], [], []>} : vector<8x32xbf16>, vector<32x96xbf16>, vector<8x96xf32> -> vector<8x96xf32>
    %27 = vector.extract_strided_slice %26 {offsets = [0, 0], sizes = [8, 32], strides = [1, 1]} : vector<8x96xf32> to vector<8x32xf32>
    %c0_16 = arith.constant 0 : index
    %c0_17 = arith.constant 0 : index
    %c0_18 = arith.constant 0 : index
    %28 = vector.load %arg11[%c0_16, %c0_17, %c0_18] : memref<1x9x32xf32, #tpu.memory_space<vmem>>, vector<1x1x32xf32>
    %29 = vector.shape_cast %28 : vector<1x1x32xf32> to vector<1x32xf32>
    %30 = vector.broadcast %29 : vector<1x32xf32> to vector<8x32xf32>
    %31 = arith.addf %27, %30 : vector<8x32xf32>
    %32 = vector.extract_strided_slice %26 {offsets = [0, 32], sizes = [8, 32], strides = [1, 1]} : vector<8x96xf32> to vector<8x32xf32>
    %c0_19 = arith.constant 0 : index
    %c1_20 = arith.constant 1 : index
    %c0_21 = arith.constant 0 : index
    %33 = vector.load %arg11[%c0_19, %c1_20, %c0_21] : memref<1x9x32xf32, #tpu.memory_space<vmem>>, vector<1x1x32xf32>
    %34 = vector.shape_cast %33 : vector<1x1x32xf32> to vector<1x32xf32>
    %35 = vector.broadcast %34 : vector<1x32xf32> to vector<8x32xf32>
    %36 = arith.addf %32, %35 : vector<8x32xf32>
    %37 = vector.extract_strided_slice %26 {offsets = [0, 64], sizes = [8, 32], strides = [1, 1]} : vector<8x96xf32> to vector<8x32xf32>
    %c0_22 = arith.constant 0 : index
    %c2 = arith.constant 2 : index
    %c0_23 = arith.constant 0 : index
    %38 = vector.load %arg11[%c0_22, %c2, %c0_23] : memref<1x9x32xf32, #tpu.memory_space<vmem>>, vector<1x1x32xf32>
    %39 = vector.shape_cast %38 : vector<1x1x32xf32> to vector<1x32xf32>
    %40 = vector.broadcast %39 : vector<1x32xf32> to vector<8x32xf32>
    %41 = arith.addf %37, %40 : vector<8x32xf32>
    %42 = vector.shape_cast %31 : vector<8x32xf32> to vector<1x8x32xf32>
    %43 = arith.truncf %42 : vector<1x8x32xf32> to vector<1x8x32xbf16>
    %44 = vector.shape_cast %36 : vector<8x32xf32> to vector<1x8x32xf32>
    %45 = arith.truncf %44 : vector<1x8x32xf32> to vector<1x8x32xbf16>
    %46 = vector.shape_cast %41 : vector<8x32xf32> to vector<1x8x32xf32>
    %47 = arith.truncf %46 : vector<1x8x32xf32> to vector<1x8x32xbf16>
    %48 = vector.extract_strided_slice %43 {offsets = [0, 0, 0], sizes = [1, 8, 16], strides = [1, 1, 1]} : vector<1x8x32xbf16> to vector<1x8x16xbf16>
    %49 = vector.extract_strided_slice %43 {offsets = [0, 0, 16], sizes = [1, 8, 16], strides = [1, 1, 1]} : vector<1x8x32xbf16> to vector<1x8x16xbf16>
    %50 = tpu.concatenate %48, %49 in 0 : vector<1x8x16xbf16>, vector<1x8x16xbf16> -> vector<2x8x16xbf16>
    %51 = vector.extract_strided_slice %45 {offsets = [0, 0, 0], sizes = [1, 8, 16], strides = [1, 1, 1]} : vector<1x8x32xbf16> to vector<1x8x16xbf16>
    %52 = vector.extract_strided_slice %45 {offsets = [0, 0, 16], sizes = [1, 8, 16], strides = [1, 1, 1]} : vector<1x8x32xbf16> to vector<1x8x16xbf16>
    %53 = tpu.concatenate %51, %52 in 0 : vector<1x8x16xbf16>, vector<1x8x16xbf16> -> vector<2x8x16xbf16>
    %54 = vector.extract_strided_slice %47 {offsets = [0, 0, 0], sizes = [1, 8, 16], strides = [1, 1, 1]} : vector<1x8x32xbf16> to vector<1x8x16xbf16>
    %55 = vector.extract_strided_slice %47 {offsets = [0, 0, 16], sizes = [1, 8, 16], strides = [1, 1, 1]} : vector<1x8x32xbf16> to vector<1x8x16xbf16>
    %56 = tpu.concatenate %54, %55 in 0 : vector<1x8x16xbf16>, vector<1x8x16xbf16> -> vector<2x8x16xbf16>
    "tpu.trace_start"() <{level = 10 : i32, message = "bqd,bkd->bqk"}> : () -> ()
    %cst_24 = arith.constant dense<0.000000e+00> : vector<2x8x8xf32>
    %57 = tpu.matmul %50, %53, %cst_24 {dimension_numbers = #tpu.dot_dimension_numbers<[2], [2], [1], [1], [0, 0, 0, 1, 1, 1], [0], [0]>} : vector<2x8x16xbf16>, vector<2x8x16xbf16>, vector<2x8x8xf32> -> vector<2x8x8xf32>
    "tpu.trace_stop"() : () -> ()
    %58 = arith.addf %57, %22 : vector<2x8x8xf32>
    %cst_25 = arith.constant dense<0xFF800000> : vector<2x8xf32>
    %59 = vector.multi_reduction <maximumf>, %58, %cst_25 [2] : vector<2x8x8xf32> to vector<2x8xf32>
    %60 = vector.shape_cast %59 : vector<2x8xf32> to vector<2x8x1xf32>
    %61 = vector.broadcast %60 : vector<2x8x1xf32> to vector<2x8x8xf32>
    %62 = arith.subf %58, %61 : vector<2x8x8xf32>
    %63 = math.exp %62 : vector<2x8x8xf32>
    %cst_26 = arith.constant dense<0.000000e+00> : vector<2x8xf32>
    %64 = vector.multi_reduction <add>, %63, %cst_26 [2] : vector<2x8x8xf32> to vector<2x8xf32>
    %65 = vector.shape_cast %64 : vector<2x8xf32> to vector<2x8x1xf32>
    %66 = tpu.reciprocal %65 {approx = true} : vector<2x8x1xf32> -> vector<2x8x1xf32>
    %67 = vector.broadcast %66 : vector<2x8x1xf32> to vector<2x8x8xf32>
    %68 = arith.mulf %63, %67 : vector<2x8x8xf32>
    %69 = arith.truncf %68 : vector<2x8x8xf32> to vector<2x8x8xbf16>
    "tpu.trace_start"() <{level = 10 : i32, message = "bqk,bkd->bqd"}> : () -> ()
    %cst_27 = arith.constant dense<0.000000e+00> : vector<2x8x16xf32>
    %70 = tpu.matmul %69, %56, %cst_27 {dimension_numbers = #tpu.dot_dimension_numbers<[2], [1], [1], [2], [0, 0, 0, 1, 1, 2], [0], [0]>} : vector<2x8x8xbf16>, vector<2x8x16xbf16>, vector<2x8x16xf32> -> vector<2x8x16xf32>
    "tpu.trace_stop"() : () -> ()
    %71 = vector.extract_strided_slice %70 {offsets = [0, 0, 0], sizes = [1, 8, 16], strides = [1, 1, 1]} : vector<2x8x16xf32> to vector<1x8x16xf32>
    %72 = vector.extract_strided_slice %70 {offsets = [1, 0, 0], sizes = [1, 8, 16], strides = [1, 1, 1]} : vector<2x8x16xf32> to vector<1x8x16xf32>
    %73 = tpu.concatenate %71, %72 in 2 : vector<1x8x16xf32>, vector<1x8x16xf32> -> vector<1x8x32xf32>
    %74 = vector.shape_cast %73 : vector<1x8x32xf32> to vector<8x32xf32>
    %75 = arith.truncf %74 : vector<8x32xf32> to vector<8x32xbf16>
    %c0_28 = arith.constant 0 : index
    %c0_29 = arith.constant 0 : index
    %c0_30 = arith.constant 0 : index
    %76 = vector.load %arg5[%c0_28, %c0_29, %c0_30] : memref<1x32x32xbf16, #tpu.memory_space<vmem>>, vector<1x32x32xbf16>
    %77 = vector.shape_cast %76 : vector<1x32x32xbf16> to vector<32x32xbf16>
    %cst_31 = arith.constant dense<0.000000e+00> : vector<8x32xf32>
    %78 = tpu.matmul %75, %77, %cst_31 {dimension_numbers = #tpu.dot_dimension_numbers<[1], [0], [0], [1], [0, 0, 1, 1], [], []>} : vector<8x32xbf16>, vector<32x32xbf16>, vector<8x32xf32> -> vector<8x32xf32>
    %c0_32 = arith.constant 0 : index
    %c3 = arith.constant 3 : index
    %c0_33 = arith.constant 0 : index
    %79 = vector.load %arg11[%c0_32, %c3, %c0_33] : memref<1x9x32xf32, #tpu.memory_space<vmem>>, vector<1x1x32xf32>
    %80 = vector.shape_cast %79 : vector<1x1x32xf32> to vector<1x32xf32>
    %81 = vector.broadcast %80 : vector<1x32xf32> to vector<8x32xf32>
    %82 = arith.addf %78, %81 : vector<8x32xf32>
    %83 = arith.addf %8, %82 : vector<8x32xf32>
    %c0_34 = arith.constant 0 : index
    %c4 = arith.constant 4 : index
    %c0_35 = arith.constant 0 : index
    %84 = vector.load %arg11[%c0_34, %c4, %c0_35] : memref<1x9x32xf32, #tpu.memory_space<vmem>>, vector<1x1x32xf32>
    %85 = vector.shape_cast %84 : vector<1x1x32xf32> to vector<1x32xf32>
    %c0_36 = arith.constant 0 : index
    %c5 = arith.constant 5 : index
    %c0_37 = arith.constant 0 : index
    %86 = vector.load %arg11[%c0_36, %c5, %c0_37] : memref<1x9x32xf32, #tpu.memory_space<vmem>>, vector<1x1x32xf32>
    %87 = vector.shape_cast %86 : vector<1x1x32xf32> to vector<1x32xf32>
    %cst_38 = arith.constant dense<0.000000e+00> : vector<8xf32>
    %88 = vector.multi_reduction <add>, %83, %cst_38 [1] : vector<8x32xf32> to vector<8xf32>
    %89 = vector.shape_cast %88 : vector<8xf32> to vector<8x1xf32>
    %cst_39 = arith.constant 3.200000e+01 : f32
    %90 = vector.broadcast %cst_39 : f32 to vector<8x1xf32>
    %91 = arith.divf %89, %90 : vector<8x1xf32>
    %92 = vector.broadcast %91 : vector<8x1xf32> to vector<8x32xf32>
    %93 = arith.subf %83, %92 : vector<8x32xf32>
    %94 = arith.mulf %93, %93 : vector<8x32xf32>
    %cst_40 = arith.constant dense<0.000000e+00> : vector<8xf32>
    %95 = vector.multi_reduction <add>, %94, %cst_40 [1] : vector<8x32xf32> to vector<8xf32>
    %96 = vector.shape_cast %95 : vector<8xf32> to vector<8x1xf32>
    %cst_41 = arith.constant 3.200000e+01 : f32
    %97 = vector.broadcast %cst_41 : f32 to vector<8x1xf32>
    %98 = arith.divf %96, %97 : vector<8x1xf32>
    %99 = vector.broadcast %91 : vector<8x1xf32> to vector<8x32xf32>
    %100 = arith.subf %83, %99 : vector<8x32xf32>
    %cst_42 = arith.constant 9.99999974E-6 : f32
    %101 = vector.broadcast %cst_42 : f32 to vector<8x1xf32>
    %102 = arith.addf %98, %101 : vector<8x1xf32>
    %103 = math.rsqrt %102 : vector<8x1xf32>
    %104 = vector.broadcast %103 : vector<8x1xf32> to vector<8x32xf32>
    %105 = arith.mulf %100, %104 : vector<8x32xf32>
    %106 = vector.broadcast %85 : vector<1x32xf32> to vector<8x32xf32>
    %107 = arith.mulf %105, %106 : vector<8x32xf32>
    %108 = vector.broadcast %87 : vector<1x32xf32> to vector<8x32xf32>
    %109 = arith.addf %107, %108 : vector<8x32xf32>
    %110 = arith.truncf %109 : vector<8x32xf32> to vector<8x32xbf16>
    %c0_43 = arith.constant 0 : index
    %c0_44 = arith.constant 0 : index
    %c0_45 = arith.constant 0 : index
    %111 = vector.load %arg6[%c0_43, %c0_44, %c0_45] : memref<1x32x128xbf16, #tpu.memory_space<vmem>>, vector<1x32x128xbf16>
    %112 = vector.shape_cast %111 : vector<1x32x128xbf16> to vector<32x128xbf16>
    %cst_46 = arith.constant dense<0.000000e+00> : vector<8x128xf32>
    %113 = tpu.matmul %110, %112, %cst_46 {dimension_numbers = #tpu.dot_dimension_numbers<[1], [0], [0], [1], [0, 0, 1, 1], [], []>} : vector<8x32xbf16>, vector<32x128xbf16>, vector<8x128xf32> -> vector<8x128xf32>
    %c0_47 = arith.constant 0 : index
    %c0_48 = arith.constant 0 : index
    %c0_49 = arith.constant 0 : index
    %114 = vector.load %arg10[%c0_47, %c0_48, %c0_49] : memref<1x1x128xf32, #tpu.memory_space<vmem>>, vector<1x1x128xf32>
    %115 = vector.shape_cast %114 : vector<1x1x128xf32> to vector<1x128xf32>
    %116 = vector.broadcast %115 : vector<1x128xf32> to vector<8x128xf32>
    %117 = arith.addf %113, %116 : vector<8x128xf32>
    %cst_50 = arith.constant 0.000000e+00 : f32
    %118 = vector.broadcast %cst_50 : f32 to vector<8x128xf32>
    %119 = arith.maximumf %117, %118 : vector<8x128xf32>
    %120 = arith.truncf %119 : vector<8x128xf32> to vector<8x128xbf16>
    %c0_51 = arith.constant 0 : index
    %c0_52 = arith.constant 0 : index
    %c0_53 = arith.constant 0 : index
    %121 = vector.load %arg7[%c0_51, %c0_52, %c0_53] : memref<1x128x32xbf16, #tpu.memory_space<vmem>>, vector<1x128x32xbf16>
    %122 = vector.shape_cast %121 : vector<1x128x32xbf16> to vector<128x32xbf16>
    %cst_54 = arith.constant dense<0.000000e+00> : vector<8x32xf32>
    %123 = tpu.matmul %120, %122, %cst_54 {dimension_numbers = #tpu.dot_dimension_numbers<[1], [0], [0], [1], [0, 0, 1, 1], [], []>} : vector<8x128xbf16>, vector<128x32xbf16>, vector<8x32xf32> -> vector<8x32xf32>
    %c0_55 = arith.constant 0 : index
    %c6 = arith.constant 6 : index
    %c0_56 = arith.constant 0 : index
    %124 = vector.load %arg11[%c0_55, %c6, %c0_56] : memref<1x9x32xf32, #tpu.memory_space<vmem>>, vector<1x1x32xf32>
    %125 = vector.shape_cast %124 : vector<1x1x32xf32> to vector<1x32xf32>
    %126 = vector.broadcast %125 : vector<1x32xf32> to vector<8x32xf32>
    %127 = arith.addf %123, %126 : vector<8x32xf32>
    %128 = arith.addf %109, %127 : vector<8x32xf32>
    %c0_57 = arith.constant 0 : index
    %c7 = arith.constant 7 : index
    %c0_58 = arith.constant 0 : index
    %129 = vector.load %arg11[%c0_57, %c7, %c0_58] : memref<1x9x32xf32, #tpu.memory_space<vmem>>, vector<1x1x32xf32>
    %130 = vector.shape_cast %129 : vector<1x1x32xf32> to vector<1x32xf32>
    %c0_59 = arith.constant 0 : index
    %c8 = arith.constant 8 : index
    %c0_60 = arith.constant 0 : index
    %131 = vector.load %arg11[%c0_59, %c8, %c0_60] : memref<1x9x32xf32, #tpu.memory_space<vmem>>, vector<1x1x32xf32>
    %132 = vector.shape_cast %131 : vector<1x1x32xf32> to vector<1x32xf32>
    %cst_61 = arith.constant dense<0.000000e+00> : vector<8xf32>
    %133 = vector.multi_reduction <add>, %128, %cst_61 [1] : vector<8x32xf32> to vector<8xf32>
    %134 = vector.shape_cast %133 : vector<8xf32> to vector<8x1xf32>
    %cst_62 = arith.constant 3.200000e+01 : f32
    %135 = vector.broadcast %cst_62 : f32 to vector<8x1xf32>
    %136 = arith.divf %134, %135 : vector<8x1xf32>
    %137 = vector.broadcast %136 : vector<8x1xf32> to vector<8x32xf32>
    %138 = arith.subf %128, %137 : vector<8x32xf32>
    %139 = arith.mulf %138, %138 : vector<8x32xf32>
    %cst_63 = arith.constant dense<0.000000e+00> : vector<8xf32>
    %140 = vector.multi_reduction <add>, %139, %cst_63 [1] : vector<8x32xf32> to vector<8xf32>
    %141 = vector.shape_cast %140 : vector<8xf32> to vector<8x1xf32>
    %cst_64 = arith.constant 3.200000e+01 : f32
    %142 = vector.broadcast %cst_64 : f32 to vector<8x1xf32>
    %143 = arith.divf %141, %142 : vector<8x1xf32>
    %144 = vector.broadcast %136 : vector<8x1xf32> to vector<8x32xf32>
    %145 = arith.subf %128, %144 : vector<8x32xf32>
    %cst_65 = arith.constant 9.99999974E-6 : f32
    %146 = vector.broadcast %cst_65 : f32 to vector<8x1xf32>
    %147 = arith.addf %143, %146 : vector<8x1xf32>
    %148 = math.rsqrt %147 : vector<8x1xf32>
    %149 = vector.broadcast %148 : vector<8x1xf32> to vector<8x32xf32>
    %150 = arith.mulf %145, %149 : vector<8x32xf32>
    %151 = vector.broadcast %130 : vector<1x32xf32> to vector<8x32xf32>
    %152 = arith.mulf %150, %151 : vector<8x32xf32>
    %153 = vector.broadcast %132 : vector<1x32xf32> to vector<8x32xf32>
    %154 = arith.addf %152, %153 : vector<8x32xf32>
    %155 = arith.truncf %154 : vector<8x32xf32> to vector<8x32xbf16>
    %c0_66 = arith.constant 0 : index
    %c0_67 = arith.constant 0 : index
    %156 = vector.load %arg8[%c0_66, %c0_67] : memref<32x32xbf16, #tpu.memory_space<vmem>>, vector<32x32xbf16>
    %cst_68 = arith.constant dense<0.000000e+00> : vector<8x32xf32>
    %157 = tpu.matmul %155, %156, %cst_68 {dimension_numbers = #tpu.dot_dimension_numbers<[1], [0], [0], [1], [0, 0, 1, 1], [], []>} : vector<8x32xbf16>, vector<32x32xbf16>, vector<8x32xf32> -> vector<8x32xf32>
    %158 = vector.broadcast %1 : vector<1x32xf32> to vector<8x32xf32>
    %159 = arith.addf %157, %158 : vector<8x32xf32>
    %cst_69 = arith.constant 0.000000e+00 : f32
    %160 = vector.broadcast %cst_69 : f32 to vector<8x32xf32>
    %161 = arith.maximumf %159, %160 : vector<8x32xf32>
    %162 = arith.truncf %161 : vector<8x32xf32> to vector<8x32xbf16>
    %c0_70 = arith.constant 0 : index
    %c0_71 = arith.constant 0 : index
    %163 = vector.load %arg9[%c0_70, %c0_71] : memref<32x1xbf16, #tpu.memory_space<vmem>>, vector<32x1xbf16>
    %cst_72 = arith.constant dense<0.000000e+00> : vector<8x1xf32>
    %164 = tpu.matmul %162, %163, %cst_72 {dimension_numbers = #tpu.dot_dimension_numbers<[1], [0], [0], [1], [0, 0, 1, 1], [], []>} : vector<8x32xbf16>, vector<32x1xbf16>, vector<8x1xf32> -> vector<8x1xf32>
    %c0_73 = arith.constant 0 : index
    %c0_74 = arith.constant 0 : index
    %165 = vector.load %arg13[%c0_73, %c0_74] : memref<1x1xf32, #tpu.memory_space<vmem>>, vector<1x1xf32>
    %166 = vector.broadcast %165 : vector<1x1xf32> to vector<8x1xf32>
    %167 = arith.addf %164, %166 : vector<8x1xf32>
    %168 = vector.shape_cast %167 : vector<8x1xf32> to vector<1x1x8xf32>
    %c0_75 = arith.constant 0 : index
    %c0_76 = arith.constant 0 : index
    %c0_77 = arith.constant 0 : index
    %169 = vector.load %arg14[%c0_75, %c0_76, %c0_77] : memref<1x1x8xf32, #tpu.memory_space<vmem>>, vector<1x1x8xf32>
    tpu.vector_store %arg14[%c0_75, %c0_76, %c0_77], %168 {strides = array<i32>} : memref<1x1x8xf32, #tpu.memory_space<vmem>>, vector<1x1x8xf32>,
    return
  }
  func.func @transform_0(%arg0: i32) -> (i32, i32, i32) {
    %c0_i32 = arith.constant 0 : i32
    %c0_i32_0 = arith.constant 0 : i32
    %c0_i32_1 = arith.constant 0 : i32
    return %arg0, %c0_i32, %c0_i32_0 : i32, i32, i32
  }
  func.func @transform_1(%arg0: i32) -> (i32, i32, i32) {
    %c0_i32 = arith.constant 0 : i32
    %c0_i32_0 = arith.constant 0 : i32
    %c0_i32_1 = arith.constant 0 : i32
    return %arg0, %c0_i32, %c0_i32_0 : i32, i32, i32
  }
  func.func @transform_2(%arg0: i32) -> (i32, i32) {
    %c0_i32 = arith.constant 0 : i32
    %c0_i32_0 = arith.constant 0 : i32
    %c0_i32_1 = arith.constant 0 : i32
    return %c0_i32, %c0_i32_0 : i32, i32
  }
  func.func @transform_3(%arg0: i32) -> (i32, i32, i32) {
    %c0_i32 = arith.constant 0 : i32
    %c0_i32_0 = arith.constant 0 : i32
    %c0_i32_1 = arith.constant 0 : i32
    %c0_i32_2 = arith.constant 0 : i32
    return %c0_i32, %c0_i32_0, %c0_i32_1 : i32, i32, i32
  }
  func.func @transform_4(%arg0: i32) -> (i32, i32, i32) {
    %c0_i32 = arith.constant 0 : i32
    %c0_i32_0 = arith.constant 0 : i32
    %c0_i32_1 = arith.constant 0 : i32
    %c0_i32_2 = arith.constant 0 : i32
    return %c0_i32, %c0_i32_0, %c0_i32_1 : i32, i32, i32
  }
  func.func @transform_5(%arg0: i32) -> (i32, i32, i32) {
    %c0_i32 = arith.constant 0 : i32
    %c0_i32_0 = arith.constant 0 : i32
    %c0_i32_1 = arith.constant 0 : i32
    %c0_i32_2 = arith.constant 0 : i32
    return %c0_i32, %c0_i32_0, %c0_i32_1 : i32, i32, i32
  }
  func.func @transform_6(%arg0: i32) -> (i32, i32, i32) {
    %c0_i32 = arith.constant 0 : i32
    %c0_i32_0 = arith.constant 0 : i32
    %c0_i32_1 = arith.constant 0 : i32
    %c0_i32_2 = arith.constant 0 : i32
    return %c0_i32, %c0_i32_0, %c0_i32_1 : i32, i32, i32
  }
  func.func @transform_7(%arg0: i32) -> (i32, i32) {
    %c0_i32 = arith.constant 0 : i32
    %c0_i32_0 = arith.constant 0 : i32
    %c0_i32_1 = arith.constant 0 : i32
    return %c0_i32, %c0_i32_0 : i32, i32
  }
  func.func @transform_8(%arg0: i32) -> (i32, i32) {
    %c0_i32 = arith.constant 0 : i32
    %c0_i32_0 = arith.constant 0 : i32
    %c0_i32_1 = arith.constant 0 : i32
    return %c0_i32, %c0_i32_0 : i32, i32
  }
  func.func @transform_9(%arg0: i32) -> (i32, i32, i32) {
    %c0_i32 = arith.constant 0 : i32
    %c0_i32_0 = arith.constant 0 : i32
    %c0_i32_1 = arith.constant 0 : i32
    %c0_i32_2 = arith.constant 0 : i32
    return %c0_i32, %c0_i32_0, %c0_i32_1 : i32, i32, i32
  }
  func.func @transform_10(%arg0: i32) -> (i32, i32, i32) {
    %c0_i32 = arith.constant 0 : i32
    %c0_i32_0 = arith.constant 0 : i32
    %c0_i32_1 = arith.constant 0 : i32
    %c0_i32_2 = arith.constant 0 : i32
    return %c0_i32, %c0_i32_0, %c0_i32_1 : i32, i32, i32
  }
  func.func @transform_11(%arg0: i32) -> (i32, i32) {
    %c0_i32 = arith.constant 0 : i32
    %c0_i32_0 = arith.constant 0 : i32
    %c0_i32_1 = arith.constant 0 : i32
    return %c0_i32, %c0_i32_0 : i32, i32
  }
  func.func @transform_12(%arg0: i32) -> (i32, i32) {
    %c0_i32 = arith.constant 0 : i32
    %c0_i32_0 = arith.constant 0 : i32
    %c0_i32_1 = arith.constant 0 : i32
    return %c0_i32, %c0_i32_0 : i32, i32
  }
  func.func @transform_13(%arg0: i32) -> (i32, i32, i32) {
    %c0_i32 = arith.constant 0 : i32
    %c0_i32_0 = arith.constant 0 : i32
    %c0_i32_1 = arith.constant 0 : i32
    return %arg0, %c0_i32, %c0_i32_0 : i32, i32, i32
  }
}

</mosaic_0001>

<bundles_post_ra>
// kernel: tpu_custom_call.1
= control target key start
LH: loop header
LB: loop body
LE: loop exit
PB: predicated region body
PF: predicated region fallthrough
CT: control target
= control target key end

     0   :  { %s2054_s0 = inlined_call_operand.vmem [shape: f32[2,8,16], index: 0, kind: input, shape index: {}]   ;;  %s2055_s1 = inlined_call_operand.vmem [shape: s8[2,8,8], index: 1, kind: input, shape index: {}]   ;;  %s2056_s2 = inlined_call_operand.vmem [shape: bf16[16,32], index: 2, kind: input, shape index: {}]   ;;  %s2057_s3 = inlined_call_operand.vmem [shape: bf16[1,32,96], index: 3, kind: input, shape index: {}]   ;;  %s2058_s4 = inlined_call_operand.vmem [shape: bf16[1,32,32], index: 4, kind: input, shape index: {}]   ;;  %s2059_s5 = inlined_call_operand.vmem [shape: bf16[1,32,128], index: 5, kind: input, shape index: {}]   ;;  %s2060_s6 = inlined_call_operand.vmem [shape: bf16[1,128,32], index: 6, kind: input, shape index: {}]   ;;  %s2061_s7 = inlined_call_operand.vmem [shape: bf16[32,32], index: 7, kind: input, shape index: {}]   ;;  %s2062_s8 = inlined_call_operand.vmem [shape: bf16[32,1], index: 8, kind: input, shape index: {}]   ;;  %s2063_s9 = inlined_call_operand.vmem [shape: f32[1,1,128], index: 9, kind: input, shape index: {}]   ;;  %s2064_s10 = inlined_call_operand.vmem [shape: f32[1,9,32], index: 10, kind: input, shape index: {}]   ;;  %s2065_s11 = inlined_call_operand.vmem [shape: f32[2,32], index: 11, kind: input, shape index: {}]   ;;  %s2066_s12 = inlined_call_operand.<no memory space> [shape: f32[1,1], index: 12, kind: input, shape index: {}]   ;;  %s2067_s13 = inlined_call_operand.hbm [shape: f32[2,1,8], index: 13, kind: output, shape index: {}]  }
   0x1   :  { %2068 = sst [smem:[#allocation6_spill]] %s2054_s0  ;;  %v18_v0 = vstv %s2066_s12 }
   0x2   :  { %2069 = sst [smem:[#allocation7_spill]] %s2055_s1  ;;  %19 = vst [vmem:[#allocation2] sm:$0x1] %v18_v0 }
   0x3   :  { %20 = vsyncpa [#allocation4], 0 }
   0x4   :  { %22 = vsyncpa [#allocation4 + $0x1], 0  ;;  %s1768_s27 = smov 0   ;;  %s1770_s28 = smov 0  }
   0x5   :  { %s1772_s29 = smov 0   ;;  %s1774_s30 = smov 0  }
   0x6 LB: > { %s1789_s12 = sadd.s32 4294967295, %s1684_s30   ;;  %s1367_s14 = sadd.s32 4294967294, %s1684_s30   ;;  %s1684_s30 = sphi %s1774_s30, %s2077_s30   ;;  %s1680_s29 = sphi %s1772_s29, %s2076_s29   ;;  %s1676_s28 = sphi %s1770_s28, %s2075_s28   ;;  %s1672_s27 = sphi %s1768_s27, %s2074_s27  }
   0x7   : > { %s1793_s15 = sadd.s32 1, %s1684_s30   ;;  %s318_s16 = sadd.s32 1, %s1680_s29 }
   0x8   : > { %s315_s17 = ssub.s32 %s1684_s30, %s1793_s15  ;;  %p328_p0 = scmp.ne.s32.totalorder %s1680_s29, %s1676_s28 }
   0x9   : > { %p316_p1 = scmp.eq.s32.totalorder %s315_s17, 0  ;;  %p329_p2 = scmp.eq.s32.totalorder %s1789_s12, 1 }
   0xa   : > { %p334_p3 = scmp.ne.s32.totalorder %s1676_s28, %s1672_s27  ;;  %p335_p4 = scmp.eq.s32.totalorder %s1367_s14, 1 }
   0xb   : > { %s1804_s18 = scalar_select %p316_p1, %s1680_s29, %s318_s16  }
   0xc   : > { %p1806_p5 = por %p329_p2, %p328_p0  ;;  %p1810_p6 = por %p335_p4, %p334_p3 }
   0xd   : > { %p1370_p7 = scmp.ge.s32.totalorder %s1684_s30, 1  ;;  %p400_p8 = scmp.lt.s32.totalorder %s1684_s30, 3 }
   0xf   : > { %p401_p9 = pnand %p1370_p7, %p400_p8 }
  0x10   : > { %v1591_v1 = vld [vmem:[%s2056_s2] sm:$0xff] (!%p401_p9)   ;;  %v1686_v2 = vmov (!%p401_p9), 0.0   ;;  %p446_p10 = scmp.lt.s32.totalorder (!%p401_p9), %s1789_s12, 1  ;;  %vm1687_vm0 = vmmov (!%p401_p9), 0   ;;  %s2072_s0 = sld [smem:[#allocation6_spill]] (!%p401_p9)  ;;  %vm471_vm1 = vcmask (!%p401_p9), 130048   ;;  %v517_v36 = vlaneseq (!%p401_p9) }
  0x11   : > { %404 = sbr.rel (%p401_p9) target bundleno = 3417 (0xd59), region = 72  ;;  %1452 = vmatprep.subr.bf16.mxu1 (!%p401_p9), %v1686_v2  ;;  %1466 = vmatprep.subr.bf16.mxu0 (!%p401_p9), %v1686_v2  ;;  %v1592_v3 = vld [vmem:[%s2057_s3] sm:$0xff] (!%p401_p9)   ;;  %v1593_v6 = vld [vmem:[%s2057_s3 + $0x8] sm:$0xff] (!%p401_p9)   ;;  %s1688_s26 = smov (!%p401_p9), 32   ;;  %vm543_vm2 = vcmask (!%p401_p9), 261120   ;;  %v1691_v25 = vmov (!%p401_p9), 0  }
  0x12   : > { %1453 = vmatpush3.bf16.msra.mxu1 (!%p401_p9), %v1591_v1  ;;  %1454 = vmatprep.mubr.msk.bf16.mxu1 (!%p401_p9), %vm1687_vm0, %v1686_v2  ;;  %v1380_v7 = vld [vmem:[%s2064_s10 + $0x1] ss:$0 sm:$0xff] (!%p401_p9)  ;;  %v1373_v8 = vld [vmem:[%s2065_s11] ss:$0 sm:$0xff] (!%p401_p9)  ;;  %s1690_s21 = smov (!%p401_p9), 96   ;;  %s1692_s14 = smov (!%p401_p9), 64  }
  0x13   : > { %1458 = vmatprep.subr.bf16.mxu1 (!%p401_p9), %v1686_v2  ;;  %1468 = vmatprep.mubr.msk.bf16.mxu0 (!%p401_p9), %vm1687_vm0, %v1686_v2  ;;  %v1379_v22 = vld [vmem:[%s2064_s10] ss:$0 sm:$0xff] (!%p401_p9)  ;;  %v1381_v29 = vld [vmem:[%s2064_s10 + $0x2] ss:$0 sm:$0xff] (!%p401_p9)  ;;  %s2073_s1 = sld [smem:[#allocation7_spill]] (!%p401_p9)  ;;  %v1882_v37 = vshrl.u32 (!%p401_p9), %v517_v36, 7 }
  0x14   : > { %599 = vrot.lane.b32.xlu0 (!%p401_p9), %v1380_v7, %s1688_s26  ;;  %1589 = vset.pattern.permute.xlu1 (!%p401_p9), %v1691_v25  ;;  %v1884_v38 = vand.u32 (!%p401_p9), 127, %v517_v36  ;;  %vm721_vm5 = vcmask (!%p401_p9), 64512   ;;  %vm751_vm6 = vcmask (!%p401_p9), 1043456   ;;  %vm1285_vm7 = vcmask (!%p401_p9), 57344  }
  0x15   : > { %1590 = vset.pattern.permute.xlu0 (!%p401_p9), %v1691_v25 }
  0x16   : > { %vm521_vm3 = vcmp.eq.s32.totalorder (!%p401_p9), %v1882_v37, %v1884_v38 }
  0x17   : > { %v522_v41 = vsel (!%p401_p9), %vm521_vm3, 1, %v1691_v25 }
  0x18   : > { %s1825_s23 = scalar_select %p446_p10, %s1789_s12, 1 }
  0x1a   : > { %s1371_s24 = sshll.u32 %s1825_s23, 3  ;;  %s1372_s16 = sshll.u32 %s1825_s23, 1 }
  0x1b   : > { %s449_s17 = scalar_lea.vmem %s2072_s0, %s1371_s24  ;;  %s453_s25 = scalar_lea.vmem %s2073_s1, %s1372_s16 }
  0x1c   : > { %v457_v4 = vld [vmem:[%s449_s17] sm:$0xff]  ;;  %s1689_s17 = smov 112   ;;  %s1415_s16 = sshll.u32 %s1789_s12, 4 }
  0x1d   : > { %v458_v5 = vpack.c.bf16 %v457_v4, %v457_v4  ;;  %v515_v39 = vld [vmem:[%s453_s25] sm:$0x3]  ;;  %s1694_s12 = smov [#allocation3]  }
  0x1e   : > { %v516_v40 = vunpack.c.0.s8 %v515_v39  ;;  %s1626_s0 = sshll.u32 %s1694_s12, 4  ;;  %s1627_s0 = int_to_ptr.vmem [resolvable:$false] %s1626_s0 }
  0x1f   : > { %1455 = vmatmul.mubr.msk.bf16.vlgmr.msra.gmra.mrb[0].mxu1 %vm471_vm1, %v458_v5  ;;  %s1628_s1 = scalar_lea.vmem %s1627_s0, 32 }
  0x20   : > { %1459 = vmatpush3.bf16.msra.mxu1 %v1592_v3  ;;  %1462 = vmatprep.mubr.msk.bf16.mxu1 %vm1687_vm0, %v1686_v2  ;;  %v523_v42 = vadd.s32 %v522_v41, %v516_v40 }
  0x21   : > { %1460 = vmatprep.subr.bf16.mxu1 %v1686_v2 }
  0x22   : > { %vm524_vm4 = vcmp.ne.s32.totalorder %v523_v42, 1 }
  0x23   : > { %v525_v43 = vsel %vm524_vm4, -1e+30, %v1686_v2 }
  0x24   : > { %1461 = vmatpush3.bf16.msra.mxu1 %v1593_v6 }
  0x25   : > { %1472 = vmatprep.subr.bf16.mxu1 %v1686_v2 }
  0x86   : > { %v600_v15 = vpop.permute.xlu0 %599 }
  0xf2   : > { %v509_v9 = vpop.f32.mrb[0].mxu1 }
  0xf3   : > { %v1851_v10 = vadd.f32 %v1373_v8, %v509_v9  ;;  %v1456_v11 = vpop.f32.mrb[1].mxu1 }
  0xf4   : > { %v512_v12 = vpop.f32.mrb[2].mxu1 }
  0xf5   : > { %v526_v13 = vpack.c.bf16 %v1851_v10, %v1851_v10  ;;  %v1457_v14 = vpop.f32.mrb[3].mxu1 }
  0xf7   : > { %1463 = vmatmul.mubr.msk.bf16.vlgmr.msra.gmra.mrb[4].mxu1 %vm543_vm2, %v526_v13 }
  0xf8   : > { %1474 = vmatprep.mubr.msk.bf16.mxu1 %vm1687_vm0, %v1686_v2 }
 0x1ca   : > { %v581_v16 = vpop.f32.mrb[4].mxu1 }
 0x1cb   : > { %v602_v17 = vadd.f32 %v600_v15, %v581_v16  ;;  %v1464_v18 = vpop.f32.mrb[5].mxu1  ;;  %v592_v23 = vadd.f32 %v1379_v22, %v581_v16  ;;  %v1595_v22 = vld [vmem:[%s2058_s4 + $0x8] sm:$0xff]  }
 0x1cc   : > { %v584_v19 = vpop.f32.mrb[6].mxu1 }
 0x1cd   : > { %v1465_v20 = vpop.f32.mrb[7].mxu1  ;;  %v614_v21 = vpack.c.bf16 %v602_v17, %v602_v17  ;;  %v613_v26 = vpack.c.bf16 %v592_v23, %v592_v23  ;;  %v1594_v17 = vld [vmem:[%s2058_s4] sm:$0xff]  }
 0x1cf   : > { %620 = vrot.lane.b32.xlu0 %v614_v21, %s1689_s17 }
 0x1d3   : > { %625 = vrot.lane.b32.xlu0 %v614_v21, %s1690_s21 }
 0x241   : > { %v621_v24 = vpop.permute.xlu0 %620 }
 0x242   : > { %673 = vrot.lane.b32.xlu1 %v621_v24, %s1690_s21 }
 0x245   : > { %v626_v27 = vpop.permute.xlu0 %625 }
 0x246   : > { %617 = vrot.lane.b32.xlu1 %v613_v26, %s1689_s17  ;;  %v631_v28 = vsel %vm471_vm1, %v626_v27, 0 }
 0x247   : > { %1467 = vmatpush3.bf16.xpose.msra.mxu0 %v631_v28 }
 0x248   : > { %1478 = vmatprep.subr.bf16.mxu0 %v1686_v2 }
 0x24a   : > { %609 = vrot.lane.b32.xlu1 %v1381_v29, %s1692_s14 }
 0x24e   : > { %1469 = vmatmul.mubr.msk.bf16.vlgmr.msra.gmra.mrb[0].mxu0 %vm471_vm1, %v613_v26 }
 0x24f   : > { %1480 = vmatprep.mubr.msk.bf16.mxu0 %vm1687_vm0, %v1686_v2 }
 0x2b4   : > { %v674_v30 = vpop.permute.xlu1 %673 }
 0x2b5   : > { %v679_v31 = vsel %vm471_vm1, %v674_v30, 0  ;;  %v1386_v30 = vld [vmem:[%s2064_s10 + $0x3] ss:$0 sm:$0xff] }
 0x2b6   : > { %1473 = vmatpush3.bf16.xpose.msra.mxu1 %v679_v31 }
 0x2b7   : > { %1484 = vmatprep.subr.bf16.mxu1 %v1686_v2 }
 0x2b8   : > { %v618_v32 = vpop.permute.xlu1 %617 }
 0x2bc   : > { %v610_v33 = vpop.permute.xlu1 %609 }
 0x2bd   : > { %v612_v34 = vadd.f32 %v610_v33, %v581_v16  ;;  %1475 = vmatmul.mubr.msk.bf16.vlgmr.msra.gmra.mrb[8].mxu1 %vm471_vm1, %v618_v32 }
 0x2be   : > { %1486 = vmatprep.mubr.msk.bf16.mxu1 %vm1687_vm0, %v1686_v2 }
 0x2bf   : > { %v615_v35 = vpack.c.bf16 %v612_v34, %v612_v34 }
 0x2c1   : > { %623 = vrot.lane.b32.xlu1 %v615_v35, %s1689_s17  ;;  %s2012_s17 = scalar_lea.hbm %s2067_s13, %s1415_s16 }
 0x321   : > { %v667_v44 = vpop.f32.mrb[0].mxu0 }
 0x322   : > { %v668_v45 = vadd.f32 %v667_v44, %v525_v43  ;;  %v1470_v46 = vpop.f32.mrb[1].mxu0 }
 0x323   : > { %v670_v47 = vpop.f32.mrb[2].mxu0  ;;  %v1598_v46 = vld [vmem:[%s2060_s6] sm:$0xff]  }
 0x324   : > { %v1471_v48 = vpop.f32.mrb[3].mxu0  ;;  %v722_v49 = vsel %vm721_vm5, %v668_v45, -inf  ;;  %v1599_v47 = vld [vmem:[%s2060_s6 + $0x8] sm:$0xff]  }
 0x325   : > { %723 = vmax.xlane.f32.xlu1 %v722_v49  ;;  %v1600_v48 = vld [vmem:[%s2060_s6 + $0x10] sm:$0xff]   ;;  %v1601_v49 = vld [vmem:[%s2060_s6 + $0x18] sm:$0xff]  }
 0x333   : > { %v624_v56 = vpop.permute.xlu1 %623 }
 0x390   : > { %v715_v50 = vpop.f32.mrb[8].mxu1 }
 0x391   : > { %v716_v51 = vadd.f32 %v715_v50, %v525_v43  ;;  %v1476_v52 = vpop.f32.mrb[9].mxu1  ;;  %v1602_v50 = vld [vmem:[%s2060_s6 + $0x20] sm:$0xff]  }
 0x392   : > { %v718_v53 = vpop.f32.mrb[10].mxu1 }
 0x393   : > { %v1477_v54 = vpop.f32.mrb[11].mxu1  ;;  %v725_v55 = vsel %vm721_vm5, %v716_v51, -inf }
 0x394   : > { %726 = vmax.xlane.f32.xlu0 %v725_v55 }
 0x3b2   : > { %v724_v57 = vpop.xlane.xlu1 %723 }
 0x3b3   : > { %v728_v58 = vsub.f32 %v668_v45, %v724_v57  ;;  %v1596_v45 = vld [vmem:[%s2059_s5] sm:$0xff]  }
 0x3b5   : > { %v730_v59 = vmul.f32 1.442695, %v728_v58  ;;  %v1391_v58 = vld [vmem:[%s2064_s10 + $0x5] ss:$0 sm:$0xff] }
 0x3b7   : > { %1610 = vpow2.f32 %v730_v59 }
 0x3c1   : > { %v1611_v60 = vpop.eup %1610 }
 0x3c2   : > { %v734_v61 = vsel %vm721_vm5, %v1611_v60, 0.0 }
 0x3c3   : > { %735 = vadd.xlane.f32.xlu1 %v734_v61 }
 0x3d4   : > { %746 = vrot.lane.b32.xlu1 %v615_v35, %s1692_s14 }
 0x421   : > { %v727_v62 = vpop.xlane.xlu0 %726 }
 0x422   : > { %v729_v63 = vsub.f32 %v716_v51, %v727_v62  ;;  %v1603_v51 = vld [vmem:[%s2060_s6 + $0x28] sm:$0xff]   ;;  %v1604_v62 = vld [vmem:[%s2060_s6 + $0x30] sm:$0xff]  }
 0x424   : > { %v732_v0 = vmul.f32 1.442695, %v729_v63  ;;  %v1605_v63 = vld [vmem:[%s2060_s6 + $0x38] sm:$0xff]  }
 0x426   : > { %1612 = vpow2.f32 %v732_v0  ;;  %v1392_v0 = vld [vmem:[%s2063_s9] ss:$0 sm:$0xff] }
 0x430   : > { %v1613_v1 = vpop.eup %1612 }
 0x431   : > { %v737_v3 = vsel %vm721_vm5, %v1613_v1, 0.0 }
 0x432   : > { %738 = vadd.xlane.f32.xlu0 %v737_v3 }
 0x448   : > { %795 = vrot.lane.b32.xlu0 %v624_v56, %s1692_s14  ;;  %s1693_s14 = smov 16   ;;  %v1390_v56 = vld [vmem:[%s2064_s10 + $0x4] ss:$0 sm:$0xff] }
 0x450   : > { %v736_v4 = vpop.xlane.xlu1 %735 }
 0x451   : > { %1614 = vrcp.f32 %v736_v4 }
 0x454   : > { %v747_v5 = vpop.permute.xlu1 %746 }
 0x455   : > { %v753_v6 = vsel %vm751_vm6, %v747_v5, 0 }
 0x456   : > { %1479 = vmatpush3.bf16.msra.mxu0 %v753_v6 }
 0x457   : > { %1490 = vmatprep.subr.bf16.mxu0 %v1686_v2 }
 0x45b   : > { %v1615_v7 = vpop.eup %1614 }
 0x45c   : > { %v742_v8 = vmul.f32 %v1615_v7, %v1611_v60 }
 0x45e   : > { %v744_v9 = vpack.c.bf16 %v742_v8, %v742_v8 }
 0x460   : > { %1481 = vmatmul.mubr.msk.bf16.vlgmr.msra.gmra.mrb[4].mxu0 %vm721_vm5, %v744_v9  ;;  %v1396_v9 = vld [vmem:[%s2064_s10 + $0x6] ss:$0 sm:$0xff] }
 0x461   : > { %1494 = vmatprep.mubr.msk.bf16.mxu0 %vm1687_vm0, %v1686_v2  ;;  %1491 = vmatpush3.bf16.msra.mxu0 %v1594_v17 }
 0x462   : > { %1492 = vmatprep.subr.bf16.mxu0 %v1686_v2 }
 0x465   : > { %1493 = vmatpush3.bf16.msra.mxu0 %v1595_v22 }
 0x466   : > { %1506 = vmatprep.subr.bf16.mxu0 %v1686_v2 }
 0x4bf   : > { %v739_v11 = vpop.xlane.xlu0 %738 }
 0x4c0   : > { %1616 = vrcp.f32 %v739_v11 }
 0x4c3   : > { %v796_v12 = vpop.permute.xlu0 %795 }
 0x4c4   : > { %v801_v13 = vsel %vm751_vm6, %v796_v12, 0 }
 0x4c5   : > { %1485 = vmatpush3.bf16.msra.mxu1 %v801_v13 }
 0x4c6   : > { %1498 = vmatprep.subr.bf16.mxu1 %v1686_v2 }
 0x4ca   : > { %v1617_v14 = vpop.eup %1616 }
 0x4cb   : > { %v743_v15 = vmul.f32 %v1617_v14, %v1613_v1 }
 0x4cd   : > { %v745_v16 = vpack.c.bf16 %v743_v15, %v743_v15 }
 0x4cf   : > { %1487 = vmatmul.mubr.msk.bf16.vlgmr.msra.gmra.mrb[12].mxu1 %vm721_vm5, %v745_v16 }
 0x4d0   : > { %1502 = vmatprep.mubr.msk.bf16.mxu1 %vm1687_vm0, %v1686_v2  ;;  %1499 = vmatpush3.bf16.msra.mxu1 %v1596_v45 }
 0x4d1   : > { %1500 = vmatprep.subr.bf16.mxu1 %v1686_v2 }
 0x533   : > { %v789_v18 = vpop.f32.mrb[4].mxu0 }
 0x534   : > { %v1482_v19 = vpop.f32.mrb[5].mxu0 }
 0x535   : > { %v792_v20 = vpop.f32.mrb[6].mxu0 }
 0x536   : > { %v1483_v21 = vpop.f32.mrb[7].mxu0 }
 0x5a2   : > { %v837_v23 = vpop.f32.mrb[12].mxu1 }
 0x5a3   : > { %844 = vrot.lane.b32.xlu0 %v837_v23, %s1693_s14  ;;  %v1488_v24 = vpop.f32.mrb[13].mxu1  ;;  %v1606_v23 = vld [vmem:[%s2061_s7] sm:$0xff]   ;;  %s444_s14 = sand.u32 1, %s1676_s28  }
 0x5a4   : > { %v840_v25 = vpop.f32.mrb[14].mxu1  ;;  %v1607_v24 = vld [vmem:[%s2061_s7 + $0x8] sm:$0xff]   ;;  %s445_s21 = scalar_lea.vmem [#allocation3], %s444_s14  ;;  %s1288_s24 = scalar_lea.sflag [#allocation4], %s444_s14 }
 0x5a5   : > { %v1489_v26 = vpop.f32.mrb[15].mxu1  ;;  %s1300_s22 = sshll.u32 %s445_s21, 4  ;;  %s2014_s22 = int_to_ptr.vmem [resolvable:$true] %s1300_s22 }
 0x5a6   : > { %s1622_s26 = scalar_lea.vmem %s2014_s22, 16  ;;  %p1629_p0 = scmp.lt.s32.totalorder %s2014_s22, %s1627_s0 }
 0x5a7   : > { %p1623_p11 = scmp.ne.s32.totalorder %s2014_s22, %s1622_s26  ;;  %p1630_p1 = scmp.lt.s32.totalorder %s1628_s1, %s1622_s26 }
 0x5a9   : > { %p1624_p12 = pnand %p1623_p11, %p1806_p5  ;;  %p1631_p2 = por %p1630_p1, %p1629_p0 }
 0x5ab   : > { %p1625_p13 = pneg %p1624_p12 }
 0x5ad   : > { %p1632_p3 = pnand %p1631_p2, %p1625_p13 }
 0x615   : > { %v845_v27 = vpop.permute.xlu0 %844 }
 0x616   : > { %v847_v28 = vsel %vm471_vm1, %v789_v18, %v845_v27 }
 0x617   : > { %v848_v29 = vpack.c.bf16 %v847_v28, %v847_v28 }
 0x619   : > { %1495 = vmatmul.mubr.msk.bf16.vlgmr.msra.gmra.mrb[8].mxu0 %vm543_vm2, %v848_v29  ;;  %v1405_v29 = vld [vmem:[%s2064_s10 + $0x7] ss:$0 sm:$0xff] }
 0x61a   : > { %1522 = vmatprep.mubr.msk.bf16.mxu0 %vm1687_vm0, %v1686_v2  ;;  %1507 = vmatpush3.bf16.msra.mxu0 %v1598_v46 }
 0x61b   : > { %1508 = vmatprep.subr.bf16.mxu0 %v1686_v2 }
 0x61e   : > { %1509 = vmatpush3.bf16.msra.mxu0 %v1599_v47 }
 0x61f   : > { %1510 = vmatprep.subr.bf16.mxu0 %v1686_v2 }
 0x622   : > { %1511 = vmatpush3.bf16.msra.mxu0 %v1600_v48 }
 0x623   : > { %1512 = vmatprep.subr.bf16.mxu0 %v1686_v2 }
 0x626   : > { %1513 = vmatpush3.bf16.msra.mxu0 %v1601_v49 }
 0x627   : > { %1514 = vmatprep.subr.bf16.mxu0 %v1686_v2 }
 0x62a   : > { %1515 = vmatpush3.bf16.msra.mxu0 %v1602_v50 }
 0x62b   : > { %1516 = vmatprep.subr.bf16.mxu0 %v1686_v2 }
 0x62e   : > { %1517 = vmatpush3.bf16.msra.mxu0 %v1603_v51  ;;  %v1282_v51 = vsub.s32 %v1884_v38, %v1882_v37 }
 0x62f   : > { %1518 = vmatprep.subr.bf16.mxu0 %v1686_v2 }
 0x632   : > { %1519 = vmatpush3.bf16.msra.mxu0 %v1604_v62 }
 0x633   : > { %1520 = vmatprep.subr.bf16.mxu0 %v1686_v2 }
 0x636   : > { %1521 = vmatpush3.bf16.msra.mxu0 %v1605_v63 }
 0x6ec   : > { %v907_v31 = vpop.f32.mrb[8].mxu0 }
 0x6ed   : > { %v908_v32 = vadd.f32 %v1386_v30, %v907_v31  ;;  %v1496_v33 = vpop.f32.mrb[9].mxu0  ;;  %v1406_v31 = vld [vmem:[%s2064_s10 + $0x8] ss:$0 sm:$0xff] }
 0x6ee   : > { %v910_v34 = vpop.f32.mrb[10].mxu0 }
 0x6ef   : > { %v1497_v35 = vpop.f32.mrb[11].mxu0  ;;  %v913_v36 = vadd.f32 %v908_v32, %v1851_v10  ;;  %v1597_v10 = vld [vmem:[%s2059_s5 + $0x8] sm:$0xff]  }
 0x6f0   : > { %1501 = vmatpush3.bf16.msra.mxu1 %v1597_v10  ;;  %v1608_v35 = vld [vmem:[%s2062_s8] sm:$0xff]  }
 0x6f1   : > { %v916_v39 = vsel %vm543_vm2, %v913_v36, 0.0  ;;  %1526 = vmatprep.subr.bf16.mxu1 %v1686_v2 }
 0x6f2   : > { %917 = vadd.xlane.f32.xlu0 %v916_v39  ;;  %v1407_v39 = vld [vmem:[%s2065_s11 + $0x1] ss:$0 sm:$0xff] }
 0x77f   : > { %v918_v40 = vpop.xlane.xlu0 %917 }
 0x780   : > { %v920_v41 = vmul.f32 0.03125, %v918_v40 }
 0x782   : > { %v921_v42 = vsub.f32 %v913_v36, %v920_v41  ;;  %v1609_v36 = vld [vmem:[%s2062_s8 + $0x8] sm:$0xff]  }
 0x784   : > { %v922_v43 = vmul.f32 %v921_v42, %v921_v42 }
 0x786   : > { %v923_v44 = vsel %vm543_vm2, %v922_v43, 0.0 }
 0x787   : > { %924 = vadd.xlane.f32.xlu1 %v923_v44 }
 0x814   : > { %v925_v52 = vpop.xlane.xlu1 %924 }
 0x815   : > { %v926_v53 = vmul.f32 0.03125, %v925_v52 }
 0x817   : > { %v927_v54 = vadd.f32 1e-05, %v926_v53 }
 0x819   : > { %1618 = vrsqrt.f32 %v927_v54 }
 0x823   : > { %v1619_v55 = vpop.eup %1618 }
 0x824   : > { %v929_v57 = vmul.f32 %v1619_v55, %v921_v42 }
 0x826   : > { %v934_v59 = vmul.f32 %v1390_v56, %v929_v57 }
 0x828   : > { %v939_v60 = vadd.f32 %v1391_v58, %v934_v59 }
 0x82a   : > { %v940_v61 = vpack.c.bf16 %v939_v60, %v939_v60 }
 0x82c   : > { %1503 = vmatmul.mubr.msk.bf16.vlgmr.msra.gmra.mrb[16].mxu1 %vm543_vm2, %v940_v61 }
 0x82d   : > { %1530 = vmatprep.mubr.msk.bf16.mxu1 %vm1687_vm0, %v1686_v2  ;;  %1527 = vmatpush3.bf16.msra.mxu1 %v1606_v23 }
 0x82e   : > { %1528 = vmatprep.subr.bf16.mxu1 %v1686_v2 }
 0x831   : > { %1529 = vmatpush3.bf16.msra.mxu1 %v1607_v24 }
 0x832   : > { %1534 = vmatprep.subr.bf16.mxu1 %v1686_v2 }
 0x8ff   : > { %v1001_v1 = vpop.f32.mrb[16].mxu1 }
 0x900   : > { %v1002_v3 = vadd.f32 %v1392_v0, %v1001_v1  ;;  %v1504_v4 = vpop.f32.mrb[17].mxu1 }
 0x901   : > { %v1004_v5 = vpop.f32.mrb[18].mxu1 }
 0x902   : > { %v1007_v6 = vmax.f32 %v1002_v3, 0.0  ;;  %v1505_v7 = vpop.f32.mrb[19].mxu1 }
 0x904   : > { %v1008_v8 = vpack.c.bf16 %v1007_v6, %v1007_v6 }
 0x906   : > { %1523 = vmatmul.mubr.bf16.vlgmr.msra.gmra.mrb[12].mxu0 %v1008_v8 }
 0x9d9   : > { %v1112_v11 = vpop.f32.mrb[12].mxu0 }
 0x9da   : > { %v1113_v12 = vadd.f32 %v1396_v9, %v1112_v11  ;;  %v1524_v13 = vpop.f32.mrb[13].mxu0 }
 0x9db   : > { %v1115_v14 = vpop.f32.mrb[14].mxu0 }
 0x9dc   : > { %v1525_v15 = vpop.f32.mrb[15].mxu0  ;;  %v1118_v16 = vadd.f32 %v1113_v12, %v939_v60 }
 0x9de   : > { %v1121_v17 = vsel %vm543_vm2, %v1118_v16, 0.0 }
 0x9df   : > { %1122 = vadd.xlane.f32.xlu0 %v1121_v17 }
 0xa6c   : > { %v1123_v18 = vpop.xlane.xlu0 %1122 }
 0xa6d   : > { %v1124_v19 = vmul.f32 0.03125, %v1123_v18 }
 0xa6f   : > { %v1125_v20 = vsub.f32 %v1118_v16, %v1124_v19 }
 0xa71   : > { %v1126_v21 = vmul.f32 %v1125_v20, %v1125_v20 }
 0xa73   : > { %v1127_v22 = vsel %vm543_vm2, %v1126_v21, 0.0 }
 0xa74   : > { %1128 = vadd.xlane.f32.xlu0 %v1127_v22 }
 0xb01   : > { %v1129_v25 = vpop.xlane.xlu0 %1128 }
 0xb02   : > { %v1130_v26 = vmul.f32 0.03125, %v1129_v25 }
 0xb04   : > { %v1131_v27 = vadd.f32 1e-05, %v1130_v26 }
 0xb06   : > { %1620 = vrsqrt.f32 %v1131_v27 }
 0xb10   : > { %v1621_v28 = vpop.eup %1620 }
 0xb11   : > { %v1133_v30 = vmul.f32 %v1621_v28, %v1125_v20 }
 0xb13   : > { %v1138_v32 = vmul.f32 %v1405_v29, %v1133_v30 }
 0xb15   : > { %v1143_v33 = vadd.f32 %v1406_v31, %v1138_v32 }
 0xb17   : > { %v1144_v34 = vpack.c.bf16 %v1143_v33, %v1143_v33 }
 0xb19   : > { %1531 = vmatmul.mubr.msk.bf16.vlgmr.msra.gmra.mrb[20].mxu1 %vm543_vm2, %v1144_v34 }
 0xb1a   : > { %1538 = vmatprep.mubr.msk.bf16.mxu1 %vm1687_vm0, %v1686_v2  ;;  %1535 = vmatpush3.bf16.msra.mxu1 %v1608_v35 }
 0xb1b   : > { %1536 = vmatprep.subr.bf16.mxu1 %v1686_v2  ;;  %v1411_v2 = vld [vmem:[#allocation2] ss:$0 sm:$0xff] }
 0xb1e   : > { %1537 = vmatpush3.bf16.msra.mxu1 %v1609_v36 }
 0xbec   : > { %v1202_v40 = vpop.f32.mrb[20].mxu1 }
 0xbed   : > { %v1203_v41 = vadd.f32 %v1407_v39, %v1202_v40  ;;  %v1532_v42 = vpop.f32.mrb[21].mxu1 }
 0xbee   : > { %v1205_v43 = vpop.f32.mrb[22].mxu1 }
 0xbef   : > { %v1208_v44 = vmax.f32 %v1203_v41, 0.0  ;;  %v1533_v45 = vpop.f32.mrb[23].mxu1 }
 0xbf1   : > { %v1209_v10 = vpack.c.bf16 %v1208_v44, %v1208_v44 }
 0xbf3   : > { %1539 = vmatmul.mubr.msk.bf16.vlgmr.msra.gmra.mrb[24].mxu1 %vm543_vm2, %v1209_v10 }
 0xcc6   : > { %v1270_v46 = vpop.f32.mrb[24].mxu1 }
 0xcc7   : > { %v1271_v47 = vadd.f32 %v1411_v2, %v1270_v46  ;;  %v1540_v48 = vpop.f32.mrb[25].mxu1 }
 0xcc8   : > { %v1273_v49 = vpop.f32.mrb[26].mxu1 }
 0xcc9   : > { %1278 = vperm.xlu1 %1589, %v1271_v47   ;;  %v1541_v50 = vpop.f32.mrb[27].mxu1 }
 0xd48   : > { %v1279_v52 = vpop.permute.xlu1 %1278 }
 0xd49   : > { %v1283_v53 = vrot.slane %v1279_v52, %v1282_v51 }
 0xd4b   : > { %1286 = vst.msk [vmem:[%s445_s21] sm:$0x1] %vm1285_vm7, %v1283_v53 }
 0xd4c   : > { %1635 = shalt.err (!%p1632_p3)
}
 0xd4d   : > { %s1636_s14 = scalar_lea.hbm %s2012_s17, 16  ;;  %s1640_s25 = scalar_lea.hbm %s2067_s13, 32 }
 0xd4e   : > { %p1637_p4 = scmp.ne.s32.totalorder %s2012_s17, %s1636_s14  ;;  %p1641_p9 = scmp.lt.u32.totalorder %s2012_s17, %s2067_s13 }
 0xd4f   : > { %p1642_p10 = scmp.lt.u32.totalorder %s1640_s25, %s1636_s14  ;;  %p1644_p12 = scmp.lt.u32.totalorder %s1636_s14, %s2012_s17 }
 0xd50   : > { %p1638_p7 = pnand %p1637_p4, %p1806_p5 }
 0xd51   : > { %p1643_p11 = por %p1642_p10, %p1641_p9 }
 0xd52   : > { %p1639_p8 = pneg %p1638_p7 }
 0xd53   : > { %p1645_p13 = por %p1644_p12, %p1643_p11 }
 0xd55   : > { %p1646_p0 = pnand %p1645_p13, %p1639_p8 }
 0xd57   : > { %1649 = shalt.err (!%p1646_p0)
}
 0xd58   : > { %1542 = dma.vmem_to_hbm [thread:$0]  (%p1806_p5), %s2014_s22, 16, %s2012_s17, %s1288_s24  }
 0xd59 PF: > { %p1548_p1 = scmp.ge.s32.totalorder %s1684_s30, 2  ;;  %s1312_s1 = sand.u32 1, %s1672_s27  }
 0xd5a   : > { %s1313_s26 = scalar_lea.sflag [#allocation4], %s1312_s1 }
 0xd5b   : > { %p1545_p2 = pnand %p1548_p1, %p1810_p6 }
 0xd5d   : > { %1667 = dma.done.wait (!%p1545_p2), %s1313_s26, 16  }
 0xd5e   : > { %1669 = vsyncadd (!%p1545_p2), %s1313_s26, 4294967280  ;;  %p25_p3 = scmp.ge.s32.totalorder %s1793_s15, 4   ;;  %s2074_s27 = smov %s1676_s28 }
 0xd5f   : > { %s2075_s28 = smov %s1680_s29  ;;  %s2076_s29 = smov %s1804_s18 }
 0xd60   : > { %s2077_s30 = smov %s1793_s15  ;;  %27 = sbr.rel (!%p25_p3) target bundleno = 6 (0x6), region = 110 }
 0xd67   :  { %1317 = vsyncpa [#allocation4], 1 }
 0xd68   :  { %1319 = vsyncpa [#allocation4 + $0x1], 1 }

// kernel: tpu_custom_call.1
= control target key start
LH: loop header
LB: loop body
LE: loop exit
PB: predicated region body
PF: predicated region fallthrough
CT: control target
= control target key end

     0   :  { %s2054_s0 = inlined_call_operand.vmem [shape: f32[2,8,16], index: 0, kind: input, shape index: {}]   ;;  %s2055_s1 = inlined_call_operand.vmem [shape: s8[2,8,8], index: 1, kind: input, shape index: {}]   ;;  %s2056_s2 = inlined_call_operand.vmem [shape: bf16[16,32], index: 2, kind: input, shape index: {}]   ;;  %s2057_s3 = inlined_call_operand.vmem [shape: bf16[1,32,96], index: 3, kind: input, shape index: {}]   ;;  %s2058_s4 = inlined_call_operand.vmem [shape: bf16[1,32,32], index: 4, kind: input, shape index: {}]   ;;  %s2059_s5 = inlined_call_operand.vmem [shape: bf16[1,32,128], index: 5, kind: input, shape index: {}]   ;;  %s2060_s6 = inlined_call_operand.vmem [shape: bf16[1,128,32], index: 6, kind: input, shape index: {}]   ;;  %s2061_s7 = inlined_call_operand.vmem [shape: bf16[32,32], index: 7, kind: input, shape index: {}]   ;;  %s2062_s8 = inlined_call_operand.vmem [shape: bf16[32,1], index: 8, kind: input, shape index: {}]   ;;  %s2063_s9 = inlined_call_operand.vmem [shape: f32[1,1,128], index: 9, kind: input, shape index: {}]   ;;  %s2064_s10 = inlined_call_operand.vmem [shape: f32[1,9,32], index: 10, kind: input, shape index: {}]   ;;  %s2065_s11 = inlined_call_operand.vmem [shape: f32[2,32], index: 11, kind: input, shape index: {}]   ;;  %s2066_s12 = inlined_call_operand.<no memory space> [shape: f32[1,1], index: 12, kind: input, shape index: {}]   ;;  %s2067_s13 = inlined_call_operand.hbm [shape: f32[2,1,8], index: 13, kind: output, shape index: {}]  }
   0x1   :  { %2068 = sst [smem:[#allocation6_spill]] %s2054_s0  ;;  %v18_v0 = vstv %s2066_s12 }
   0x2   :  { %2069 = sst [smem:[#allocation7_spill]] %s2055_s1  ;;  %19 = vst [vmem:[#allocation2] sm:$0x1] %v18_v0 }
   0x3   :  { %20 = vsyncpa [#allocation4], 0 }
   0x4   :  { %22 = vsyncpa [#allocation4 + $0x1], 0  ;;  %s1768_s27 = smov 0   ;;  %s1770_s28 = smov 0  }
   0x5   :  { %s1772_s29 = smov 0   ;;  %s1774_s30 = smov 0  }
   0x6 LB: > { %s1789_s12 = sadd.s32 4294967295, %s1684_s30   ;;  %s1367_s14 = sadd.s32 4294967294, %s1684_s30   ;;  %s1684_s30 = sphi %s1774_s30, %s2077_s30   ;;  %s1680_s29 = sphi %s1772_s29, %s2076_s29   ;;  %s1676_s28 = sphi %s1770_s28, %s2075_s28   ;;  %s1672_s27 = sphi %s1768_s27, %s2074_s27  }
   0x7   : > { %s1793_s15 = sadd.s32 1, %s1684_s30   ;;  %s318_s16 = sadd.s32 1, %s1680_s29 }
   0x8   : > { %s315_s17 = ssub.s32 %s1684_s30, %s1793_s15  ;;  %p328_p0 = scmp.ne.s32.totalorder %s1680_s29, %s1676_s28 }
   0x9   : > { %p316_p1 = scmp.eq.s32.totalorder %s315_s17, 0  ;;  %p329_p2 = scmp.eq.s32.totalorder %s1789_s12, 1 }
   0xa   : > { %p334_p3 = scmp.ne.s32.totalorder %s1676_s28, %s1672_s27  ;;  %p335_p4 = scmp.eq.s32.totalorder %s1367_s14, 1 }
   0xb   : > { %s1804_s18 = scalar_select %p316_p1, %s1680_s29, %s318_s16  }
   0xc   : > { %p1806_p5 = por %p329_p2, %p328_p0  ;;  %p1810_p6 = por %p335_p4, %p334_p3 }
   0xd   : > { %p1370_p7 = scmp.ge.s32.totalorder %s1684_s30, 1  ;;  %p400_p8 = scmp.lt.s32.totalorder %s1684_s30, 3 }
   0xf   : > { %p401_p9 = pnand %p1370_p7, %p400_p8 }
  0x10   : > { %v1591_v1 = vld [vmem:[%s2056_s2] sm:$0xff] (!%p401_p9)   ;;  %v1686_v2 = vmov (!%p401_p9), 0.0   ;;  %p446_p10 = scmp.lt.s32.totalorder (!%p401_p9), %s1789_s12, 1  ;;  %vm1687_vm0 = vmmov (!%p401_p9), 0   ;;  %s2072_s0 = sld [smem:[#allocation6_spill]] (!%p401_p9)  ;;  %vm471_vm1 = vcmask (!%p401_p9), 130048   ;;  %v517_v36 = vlaneseq (!%p401_p9) }
  0x11   : > { %404 = sbr.rel (%p401_p9) target bundleno = 3417 (0xd59), region = 72  ;;  %1452 = vmatprep.subr.bf16.mxu1 (!%p401_p9), %v1686_v2  ;;  %1466 = vmatprep.subr.bf16.mxu0 (!%p401_p9), %v1686_v2  ;;  %v1592_v3 = vld [vmem:[%s2057_s3] sm:$0xff] (!%p401_p9)   ;;  %v1593_v6 = vld [vmem:[%s2057_s3 + $0x8] sm:$0xff] (!%p401_p9)   ;;  %s1688_s26 = smov (!%p401_p9), 32   ;;  %vm543_vm2 = vcmask (!%p401_p9), 261120   ;;  %v1691_v25 = vmov (!%p401_p9), 0  }
  0x12   : > { %1453 = vmatpush3.bf16.msra.mxu1 (!%p401_p9), %v1591_v1  ;;  %1454 = vmatprep.mubr.msk.bf16.mxu1 (!%p401_p9), %vm1687_vm0, %v1686_v2  ;;  %v1380_v7 = vld [vmem:[%s2064_s10 + $0x1] ss:$0 sm:$0xff] (!%p401_p9)  ;;  %v1373_v8 = vld [vmem:[%s2065_s11] ss:$0 sm:$0xff] (!%p401_p9)  ;;  %s1690_s21 = smov (!%p401_p9), 96   ;;  %s1692_s14 = smov (!%p401_p9), 64  }
  0x13   : > { %1458 = vmatprep.subr.bf16.mxu1 (!%p401_p9), %v1686_v2  ;;  %1468 = vmatprep.mubr.msk.bf16.mxu0 (!%p401_p9), %vm1687_vm0, %v1686_v2  ;;  %v1379_v22 = vld [vmem:[%s2064_s10] ss:$0 sm:$0xff] (!%p401_p9)  ;;  %v1381_v29 = vld [vmem:[%s2064_s10 + $0x2] ss:$0 sm:$0xff] (!%p401_p9)  ;;  %s2073_s1 = sld [smem:[#allocation7_spill]] (!%p401_p9)  ;;  %v1882_v37 = vshrl.u32 (!%p401_p9), %v517_v36, 7 }
  0x14   : > { %599 = vrot.lane.b32.xlu0 (!%p401_p9), %v1380_v7, %s1688_s26  ;;  %1589 = vset.pattern.permute.xlu1 (!%p401_p9), %v1691_v25  ;;  %v1884_v38 = vand.u32 (!%p401_p9), 127, %v517_v36  ;;  %vm721_vm5 = vcmask (!%p401_p9), 64512   ;;  %vm751_vm6 = vcmask (!%p401_p9), 1043456   ;;  %vm1285_vm7 = vcmask (!%p401_p9), 57344  }
  0x15   : > { %1590 = vset.pattern.permute.xlu0 (!%p401_p9), %v1691_v25 }
  0x16   : > { %vm521_vm3 = vcmp.eq.s32.totalorder (!%p401_p9), %v1882_v37, %v1884_v38 }
  0x17   : > { %v522_v41 = vsel (!%p401_p9), %vm521_vm3, 1, %v1691_v25 }
  0x18   : > { %s1825_s23 = scalar_select %p446_p10, %s1789_s12, 1 }
  0x1a   : > { %s1371_s24 = sshll.u32 %s1825_s23, 3  ;;  %s1372_s16 = sshll.u32 %s1825_s23, 1 }
  0x1b   : > { %s449_s17 = scalar_lea.vmem %s2072_s0, %s1371_s24  ;;  %s453_s25 = scalar_lea.vmem %s2073_s1, %s1372_s16 }
  0x1c   : > { %v457_v4 = vld [vmem:[%s449_s17] sm:$0xff]  ;;  %s1689_s17 = smov 112   ;;  %s1415_s16 = sshll.u32 %s1789_s12, 4 }
  0x1d   : > { %v458_v5 = vpack.c.bf16 %v457_v4, %v457_v4  ;;  %v515_v39 = vld [vmem:[%s453_s25] sm:$0x3]  ;;  %s1694_s12 = smov [#allocation3]  }
  0x1e   : > { %v516_v40 = vunpack.c.0.s8 %v515_v39  ;;  %s1626_s0 = sshll.u32 %s1694_s12, 4  ;;  %s1627_s0 = int_to_ptr.vmem [resolvable:$false] %s1626_s0 }
  0x1f   : > { %1455 = vmatmul.mubr.msk.bf16.vlgmr.msra.gmra.mrb[0].mxu1 %vm471_vm1, %v458_v5  ;;  %s1628_s1 = scalar_lea.vmem %s1627_s0, 32 }
  0x20   : > { %1459 = vmatpush3.bf16.msra.mxu1 %v1592_v3  ;;  %1462 = vmatprep.mubr.msk.bf16.mxu1 %vm1687_vm0, %v1686_v2  ;;  %v523_v42 = vadd.s32 %v522_v41, %v516_v40 }
  0x21   : > { %1460 = vmatprep.subr.bf16.mxu1 %v1686_v2 }
  0x22   : > { %vm524_vm4 = vcmp.ne.s32.totalorder %v523_v42, 1 }
  0x23   : > { %v525_v43 = vsel %vm524_vm4, -1e+30, %v1686_v2 }
  0x24   : > { %1461 = vmatpush3.bf16.msra.mxu1 %v1593_v6 }
  0x25   : > { %1472 = vmatprep.subr.bf16.mxu1 %v1686_v2 }
  0x86   : > { %v600_v15 = vpop.permute.xlu0 %599 }
  0xf2   : > { %v509_v9 = vpop.f32.mrb[0].mxu1 }
  0xf3   : > { %v1851_v10 = vadd.f32 %v1373_v8, %v509_v9  ;;  %v1456_v11 = vpop.f32.mrb[1].mxu1 }
  0xf4   : > { %v512_v12 = vpop.f32.mrb[2].mxu1 }
  0xf5   : > { %v526_v13 = vpack.c.bf16 %v1851_v10, %v1851_v10  ;;  %v1457_v14 = vpop.f32.mrb[3].mxu1 }
  0xf7   : > { %1463 = vmatmul.mubr.msk.bf16.vlgmr.msra.gmra.mrb[4].mxu1 %vm543_vm2, %v526_v13 }
  0xf8   : > { %1474 = vmatprep.mubr.msk.bf16.mxu1 %vm1687_vm0, %v1686_v2 }
 0x1ca   : > { %v581_v16 = vpop.f32.mrb[4].mxu1 }
 0x1cb   : > { %v602_v17 = vadd.f32 %v600_v15, %v581_v16  ;;  %v1464_v18 = vpop.f32.mrb[5].mxu1  ;;  %v592_v23 = vadd.f32 %v1379_v22, %v581_v16  ;;  %v1595_v22 = vld [vmem:[%s2058_s4 + $0x8] sm:$0xff]  }
 0x1cc   : > { %v584_v19 = vpop.f32.mrb[6].mxu1 }
 0x1cd   : > { %v1465_v20 = vpop.f32.mrb[7].mxu1  ;;  %v614_v21 = vpack.c.bf16 %v602_v17, %v602_v17  ;;  %v613_v26 = vpack.c.bf16 %v592_v23, %v592_v23  ;;  %v1594_v17 = vld [vmem:[%s2058_s4] sm:$0xff]  }
 0x1cf   : > { %620 = vrot.lane.b32.xlu0 %v614_v21, %s1689_s17 }
 0x1d3   : > { %625 = vrot.lane.b32.xlu0 %v614_v21, %s1690_s21 }
 0x241   : > { %v621_v24 = vpop.permute.xlu0 %620 }
 0x242   : > { %673 = vrot.lane.b32.xlu1 %v621_v24, %s1690_s21 }
 0x245   : > { %v626_v27 = vpop.permute.xlu0 %625 }
 0x246   : > { %617 = vrot.lane.b32.xlu1 %v613_v26, %s1689_s17  ;;  %v631_v28 = vsel %vm471_vm1, %v626_v27, 0 }
 0x247   : > { %1467 = vmatpush3.bf16.xpose.msra.mxu0 %v631_v28 }
 0x248   : > { %1478 = vmatprep.subr.bf16.mxu0 %v1686_v2 }
 0x24a   : > { %609 = vrot.lane.b32.xlu1 %v1381_v29, %s1692_s14 }
 0x24e   : > { %1469 = vmatmul.mubr.msk.bf16.vlgmr.msra.gmra.mrb[0].mxu0 %vm471_vm1, %v613_v26 }
 0x24f   : > { %1480 = vmatprep.mubr.msk.bf16.mxu0 %vm1687_vm0, %v1686_v2 }
 0x2b4   : > { %v674_v30 = vpop.permute.xlu1 %673 }
 0x2b5   : > { %v679_v31 = vsel %vm471_vm1, %v674_v30, 0  ;;  %v1386_v30 = vld [vmem:[%s2064_s10 + $0x3] ss:$0 sm:$0xff] }
 0x2b6   : > { %1473 = vmatpush3.bf16.xpose.msra.mxu1 %v679_v31 }
 0x2b7   : > { %1484 = vmatprep.subr.bf16.mxu1 %v1686_v2 }
 0x2b8   : > { %v618_v32 = vpop.permute.xlu1 %617 }
 0x2bc   : > { %v610_v33 = vpop.permute.xlu1 %609 }
 0x2bd   : > { %v612_v34 = vadd.f32 %v610_v33, %v581_v16  ;;  %1475 = vmatmul.mubr.msk.bf16.vlgmr.msra.gmra.mrb[8].mxu1 %vm471_vm1, %v618_v32 }
 0x2be   : > { %1486 = vmatprep.mubr.msk.bf16.mxu1 %vm1687_vm0, %v1686_v2 }
 0x2bf   : > { %v615_v35 = vpack.c.bf16 %v612_v34, %v612_v34 }
 0x2c1   : > { %623 = vrot.lane.b32.xlu1 %v615_v35, %s1689_s17  ;;  %s2012_s17 = scalar_lea.hbm %s2067_s13, %s1415_s16 }
 0x321   : > { %v667_v44 = vpop.f32.mrb[0].mxu0 }
 0x322   : > { %v668_v45 = vadd.f32 %v667_v44, %v525_v43  ;;  %v1470_v46 = vpop.f32.mrb[1].mxu0 }
 0x323   : > { %v670_v47 = vpop.f32.mrb[2].mxu0  ;;  %v1598_v46 = vld [vmem:[%s2060_s6] sm:$0xff]  }
 0x324   : > { %v1471_v48 = vpop.f32.mrb[3].mxu0  ;;  %v722_v49 = vsel %vm721_vm5, %v668_v45, -inf  ;;  %v1599_v47 = vld [vmem:[%s2060_s6 + $0x8] sm:$0xff]  }
 0x325   : > { %723 = vmax.xlane.f32.xlu1 %v722_v49  ;;  %v1600_v48 = vld [vmem:[%s2060_s6 + $0x10] sm:$0xff]   ;;  %v1601_v49 = vld [vmem:[%s2060_s6 + $0x18] sm:$0xff]  }
 0x333   : > { %v624_v56 = vpop.permute.xlu1 %623 }
 0x390   : > { %v715_v50 = vpop.f32.mrb[8].mxu1 }
 0x391   : > { %v716_v51 = vadd.f32 %v715_v50, %v525_v43  ;;  %v1476_v52 = vpop.f32.mrb[9].mxu1  ;;  %v1602_v50 = vld [vmem:[%s2060_s6 + $0x20] sm:$0xff]  }
 0x392   : > { %v718_v53 = vpop.f32.mrb[10].mxu1 }
 0x393   : > { %v1477_v54 = vpop.f32.mrb[11].mxu1  ;;  %v725_v55 = vsel %vm721_vm5, %v716_v51, -inf }
 0x394   : > { %726 = vmax.xlane.f32.xlu0 %v725_v55 }
 0x3b2   : > { %v724_v57 = vpop.xlane.xlu1 %723 }
 0x3b3   : > { %v728_v58 = vsub.f32 %v668_v45, %v724_v57  ;;  %v1596_v45 = vld [vmem:[%s2059_s5] sm:$0xff]  }
 0x3b5   : > { %v730_v59 = vmul.f32 1.442695, %v728_v58  ;;  %v1391_v58 = vld [vmem:[%s2064_s10 + $0x5] ss:$0 sm:$0xff] }
 0x3b7   : > { %1610 = vpow2.f32 %v730_v59 }
 0x3c1   : > { %v1611_v60 = vpop.eup %1610 }
 0x3c2   : > { %v734_v61 = vsel %vm721_vm5, %v1611_v60, 0.0 }
 0x3c3   : > { %735 = vadd.xlane.f32.xlu1 %v734_v61 }
 0x3d4   : > { %746 = vrot.lane.b32.xlu1 %v615_v35, %s1692_s14 }
 0x421   : > { %v727_v62 = vpop.xlane.xlu0 %726 }
 0x422   : > { %v729_v63 = vsub.f32 %v716_v51, %v727_v62  ;;  %v1603_v51 = vld [vmem:[%s2060_s6 + $0x28] sm:$0xff]   ;;  %v1604_v62 = vld [vmem:[%s2060_s6 + $0x30] sm:$0xff]  }
 0x424   : > { %v732_v0 = vmul.f32 1.442695, %v729_v63  ;;  %v1605_v63 = vld [vmem:[%s2060_s6 + $0x38] sm:$0xff]  }
 0x426   : > { %1612 = vpow2.f32 %v732_v0  ;;  %v1392_v0 = vld [vmem:[%s2063_s9] ss:$0 sm:$0xff] }
 0x430   : > { %v1613_v1 = vpop.eup %1612 }
 0x431   : > { %v737_v3 = vsel %vm721_vm5, %v1613_v1, 0.0 }
 0x432   : > { %738 = vadd.xlane.f32.xlu0 %v737_v3 }
 0x448   : > { %795 = vrot.lane.b32.xlu0 %v624_v56, %s1692_s14  ;;  %s1693_s14 = smov 16   ;;  %v1390_v56 = vld [vmem:[%s2064_s10 + $0x4] ss:$0 sm:$0xff] }
 0x450   : > { %v736_v4 = vpop.xlane.xlu1 %735 }
 0x451   : > { %1614 = vrcp.f32 %v736_v4 }
 0x454   : > { %v747_v5 = vpop.permute.xlu1 %746 }
 0x455   : > { %v753_v6 = vsel %vm751_vm6, %v747_v5, 0 }
 0x456   : > { %1479 = vmatpush3.bf16.msra.mxu0 %v753_v6 }
 0x457   : > { %1490 = vmatprep.subr.bf16.mxu0 %v1686_v2 }
 0x45b   : > { %v1615_v7 = vpop.eup %1614 }
 0x45c   : > { %v742_v8 = vmul.f32 %v1615_v7, %v1611_v60 }
 0x45e   : > { %v744_v9 = vpack.c.bf16 %v742_v8, %v742_v8 }
 0x460   : > { %1481 = vmatmul.mubr.msk.bf16.vlgmr.msra.gmra.mrb[4].mxu0 %vm721_vm5, %v744_v9  ;;  %v1396_v9 = vld [vmem:[%s2064_s10 + $0x6] ss:$0 sm:$0xff] }
 0x461   : > { %1494 = vmatprep.mubr.msk.bf16.mxu0 %vm1687_vm0, %v1686_v2  ;;  %1491 = vmatpush3.bf16.msra.mxu0 %v1594_v17 }
 0x462   : > { %1492 = vmatprep.subr.bf16.mxu0 %v1686_v2 }
 0x465   : > { %1493 = vmatpush3.bf16.msra.mxu0 %v1595_v22 }
 0x466   : > { %1506 = vmatprep.subr.bf16.mxu0 %v1686_v2 }
 0x4bf   : > { %v739_v11 = vpop.xlane.xlu0 %738 }
 0x4c0   : > { %1616 = vrcp.f32 %v739_v11 }
 0x4c3   : > { %v796_v12 = vpop.permute.xlu0 %795 }
 0x4c4   : > { %v801_v13 = vsel %vm751_vm6, %v796_v12, 0 }
 0x4c5   : > { %1485 = vmatpush3.bf16.msra.mxu1 %v801_v13 }
 0x4c6   : > { %1498 = vmatprep.subr.bf16.mxu1 %v1686_v2 }
 0x4ca   : > { %v1617_v14 = vpop.eup %1616 }
 0x4cb   : > { %v743_v15 = vmul.f32 %v1617_v14, %v1613_v1 }
 0x4cd   : > { %v745_v16 = vpack.c.bf16 %v743_v15, %v743_v15 }
 0x4cf   : > { %1487 = vmatmul.mubr.msk.bf16.vlgmr.msra.gmra.mrb[12].mxu1 %vm721_vm5, %v745_v16 }
 0x4d0   : > { %1502 = vmatprep.mubr.msk.bf16.mxu1 %vm1687_vm0, %v1686_v2  ;;  %1499 = vmatpush3.bf16.msra.mxu1 %v1596_v45 }
 0x4d1   : > { %1500 = vmatprep.subr.bf16.mxu1 %v1686_v2 }
 0x533   : > { %v789_v18 = vpop.f32.mrb[4].mxu0 }
 0x534   : > { %v1482_v19 = vpop.f32.mrb[5].mxu0 }
 0x535   : > { %v792_v20 = vpop.f32.mrb[6].mxu0 }
 0x536   : > { %v1483_v21 = vpop.f32.mrb[7].mxu0 }
 0x5a2   : > { %v837_v23 = vpop.f32.mrb[12].mxu1 }
 0x5a3   : > { %844 = vrot.lane.b32.xlu0 %v837_v23, %s1693_s14  ;;  %v1488_v24 = vpop.f32.mrb[13].mxu1  ;;  %v1606_v23 = vld [vmem:[%s2061_s7] sm:$0xff]   ;;  %s444_s14 = sand.u32 1, %s1676_s28  }
 0x5a4   : > { %v840_v25 = vpop.f32.mrb[14].mxu1  ;;  %v1607_v24 = vld [vmem:[%s2061_s7 + $0x8] sm:$0xff]   ;;  %s445_s21 = scalar_lea.vmem [#allocation3], %s444_s14  ;;  %s1288_s24 = scalar_lea.sflag [#allocation4], %s444_s14 }
 0x5a5   : > { %v1489_v26 = vpop.f32.mrb[15].mxu1  ;;  %s1300_s22 = sshll.u32 %s445_s21, 4  ;;  %s2014_s22 = int_to_ptr.vmem [resolvable:$true] %s1300_s22 }
 0x5a6   : > { %s1622_s26 = scalar_lea.vmem %s2014_s22, 16  ;;  %p1629_p0 = scmp.lt.s32.totalorder %s2014_s22, %s1627_s0 }
 0x5a7   : > { %p1623_p11 = scmp.ne.s32.totalorder %s2014_s22, %s1622_s26  ;;  %p1630_p1 = scmp.lt.s32.totalorder %s1628_s1, %s1622_s26 }
 0x5a9   : > { %p1624_p12 = pnand %p1623_p11, %p1806_p5  ;;  %p1631_p2 = por %p1630_p1, %p1629_p0 }
 0x5ab   : > { %p1625_p13 = pneg %p1624_p12 }
 0x5ad   : > { %p1632_p3 = pnand %p1631_p2, %p1625_p13 }
 0x615   : > { %v845_v27 = vpop.permute.xlu0 %844 }
 0x616   : > { %v847_v28 = vsel %vm471_vm1, %v789_v18, %v845_v27 }
 0x617   : > { %v848_v29 = vpack.c.bf16 %v847_v28, %v847_v28 }
 0x619   : > { %1495 = vmatmul.mubr.msk.bf16.vlgmr.msra.gmra.mrb[8].mxu0 %vm543_vm2, %v848_v29  ;;  %v1405_v29 = vld [vmem:[%s2064_s10 + $0x7] ss:$0 sm:$0xff] }
 0x61a   : > { %1522 = vmatprep.mubr.msk.bf16.mxu0 %vm1687_vm0, %v1686_v2  ;;  %1507 = vmatpush3.bf16.msra.mxu0 %v1598_v46 }
 0x61b   : > { %1508 = vmatprep.subr.bf16.mxu0 %v1686_v2 }
 0x61e   : > { %1509 = vmatpush3.bf16.msra.mxu0 %v1599_v47 }
 0x61f   : > { %1510 = vmatprep.subr.bf16.mxu0 %v1686_v2 }
 0x622   : > { %1511 = vmatpush3.bf16.msra.mxu0 %v1600_v48 }
 0x623   : > { %1512 = vmatprep.subr.bf16.mxu0 %v1686_v2 }
 0x626   : > { %1513 = vmatpush3.bf16.msra.mxu0 %v1601_v49 }
 0x627   : > { %1514 = vmatprep.subr.bf16.mxu0 %v1686_v2 }
 0x62a   : > { %1515 = vmatpush3.bf16.msra.mxu0 %v1602_v50 }
 0x62b   : > { %1516 = vmatprep.subr.bf16.mxu0 %v1686_v2 }
 0x62e   : > { %1517 = vmatpush3.bf16.msra.mxu0 %v1603_v51  ;;  %v1282_v51 = vsub.s32 %v1884_v38, %v1882_v37 }
 0x62f   : > { %1518 = vmatprep.subr.bf16.mxu0 %v1686_v2 }
 0x632   : > { %1519 = vmatpush3.bf16.msra.mxu0 %v1604_v62 }
 0x633   : > { %1520 = vmatprep.subr.bf16.mxu0 %v1686_v2 }
 0x636   : > { %1521 = vmatpush3.bf16.msra.mxu0 %v1605_v63 }
 0x6ec   : > { %v907_v31 = vpop.f32.mrb[8].mxu0 }
 0x6ed   : > { %v908_v32 = vadd.f32 %v1386_v30, %v907_v31  ;;  %v1496_v33 = vpop.f32.mrb[9].mxu0  ;;  %v1406_v31 = vld [vmem:[%s2064_s10 + $0x8] ss:$0 sm:$0xff] }
 0x6ee   : > { %v910_v34 = vpop.f32.mrb[10].mxu0 }
 0x6ef   : > { %v1497_v35 = vpop.f32.mrb[11].mxu0  ;;  %v913_v36 = vadd.f32 %v908_v32, %v1851_v10  ;;  %v1597_v10 = vld [vmem:[%s2059_s5 + $0x8] sm:$0xff]  }
 0x6f0   : > { %1501 = vmatpush3.bf16.msra.mxu1 %v1597_v10  ;;  %v1608_v35 = vld [vmem:[%s2062_s8] sm:$0xff]  }
 0x6f1   : > { %v916_v39 = vsel %vm543_vm2, %v913_v36, 0.0  ;;  %1526 = vmatprep.subr.bf16.mxu1 %v1686_v2 }
 0x6f2   : > { %917 = vadd.xlane.f32.xlu0 %v916_v39  ;;  %v1407_v39 = vld [vmem:[%s2065_s11 + $0x1] ss:$0 sm:$0xff] }
 0x77f   : > { %v918_v40 = vpop.xlane.xlu0 %917 }
 0x780   : > { %v920_v41 = vmul.f32 0.03125, %v918_v40 }
 0x782   : > { %v921_v42 = vsub.f32 %v913_v36, %v920_v41  ;;  %v1609_v36 = vld [vmem:[%s2062_s8 + $0x8] sm:$0xff]  }
 0x784   : > { %v922_v43 = vmul.f32 %v921_v42, %v921_v42 }
 0x786   : > { %v923_v44 = vsel %vm543_vm2, %v922_v43, 0.0 }
 0x787   : > { %924 = vadd.xlane.f32.xlu1 %v923_v44 }
 0x814   : > { %v925_v52 = vpop.xlane.xlu1 %924 }
 0x815   : > { %v926_v53 = vmul.f32 0.03125, %v925_v52 }
 0x817   : > { %v927_v54 = vadd.f32 1e-05, %v926_v53 }
 0x819   : > { %1618 = vrsqrt.f32 %v927_v54 }
 0x823   : > { %v1619_v55 = vpop.eup %1618 }
 0x824   : > { %v929_v57 = vmul.f32 %v1619_v55, %v921_v42 }
 0x826   : > { %v934_v59 = vmul.f32 %v1390_v56, %v929_v57 }
 0x828   : > { %v939_v60 = vadd.f32 %v1391_v58, %v934_v59 }
 0x82a   : > { %v940_v61 = vpack.c.bf16 %v939_v60, %v939_v60 }
 0x82c   : > { %1503 = vmatmul.mubr.msk.bf16.vlgmr.msra.gmra.mrb[16].mxu1 %vm543_vm2, %v940_v61 }
 0x82d   : > { %1530 = vmatprep.mubr.msk.bf16.mxu1 %vm1687_vm0, %v1686_v2  ;;  %1527 = vmatpush3.bf16.msra.mxu1 %v1606_v23 }
 0x82e   : > { %1528 = vmatprep.subr.bf16.mxu1 %v1686_v2 }
 0x831   : > { %1529 = vmatpush3.bf16.msra.mxu1 %v1607_v24 }
 0x832   : > { %1534 = vmatprep.subr.bf16.mxu1 %v1686_v2 }
 0x8ff   : > { %v1001_v1 = vpop.f32.mrb[16].mxu1 }
 0x900   : > { %v1002_v3 = vadd.f32 %v1392_v0, %v1001_v1  ;;  %v1504_v4 = vpop.f32.mrb[17].mxu1 }
 0x901   : > { %v1004_v5 = vpop.f32.mrb[18].mxu1 }
 0x902   : > { %v1007_v6 = vmax.f32 %v1002_v3, 0.0  ;;  %v1505_v7 = vpop.f32.mrb[19].mxu1 }
 0x904   : > { %v1008_v8 = vpack.c.bf16 %v1007_v6, %v1007_v6 }
 0x906   : > { %1523 = vmatmul.mubr.bf16.vlgmr.msra.gmra.mrb[12].mxu0 %v1008_v8 }
 0x9d9   : > { %v1112_v11 = vpop.f32.mrb[12].mxu0 }
 0x9da   : > { %v1113_v12 = vadd.f32 %v1396_v9, %v1112_v11  ;;  %v1524_v13 = vpop.f32.mrb[13].mxu0 }
 0x9db   : > { %v1115_v14 = vpop.f32.mrb[14].mxu0 }
 0x9dc   : > { %v1525_v15 = vpop.f32.mrb[15].mxu0  ;;  %v1118_v16 = vadd.f32 %v1113_v12, %v939_v60 }
 0x9de   : > { %v1121_v17 = vsel %vm543_vm2, %v1118_v16, 0.0 }
 0x9df   : > { %1122 = vadd.xlane.f32.xlu0 %v1121_v17 }
 0xa6c   : > { %v1123_v18 = vpop.xlane.xlu0 %1122 }
 0xa6d   : > { %v1124_v19 = vmul.f32 0.03125, %v1123_v18 }
 0xa6f   : > { %v1125_v20 = vsub.f32 %v1118_v16, %v1124_v19 }
 0xa71   : > { %v1126_v21 = vmul.f32 %v1125_v20, %v1125_v20 }
 0xa73   : > { %v1127_v22 = vsel %vm543_vm2, %v1126_v21, 0.0 }
 0xa74   : > { %1128 = vadd.xlane.f32.xlu0 %v1127_v22 }
 0xb01   : > { %v1129_v25 = vpop.xlane.xlu0 %1128 }
 0xb02   : > { %v1130_v26 = vmul.f32 0.03125, %v1129_v25 }
 0xb04   : > { %v1131_v27 = vadd.f32 1e-05, %v1130_v26 }
 0xb06   : > { %1620 = vrsqrt.f32 %v1131_v27 }
 0xb10   : > { %v1621_v28 = vpop.eup %1620 }
 0xb11   : > { %v1133_v30 = vmul.f32 %v1621_v28, %v1125_v20 }
 0xb13   : > { %v1138_v32 = vmul.f32 %v1405_v29, %v1133_v30 }
 0xb15   : > { %v1143_v33 = vadd.f32 %v1406_v31, %v1138_v32 }
 0xb17   : > { %v1144_v34 = vpack.c.bf16 %v1143_v33, %v1143_v33 }
 0xb19   : > { %1531 = vmatmul.mubr.msk.bf16.vlgmr.msra.gmra.mrb[20].mxu1 %vm543_vm2, %v1144_v34 }
 0xb1a   : > { %1538 = vmatprep.mubr.msk.bf16.mxu1 %vm1687_vm0, %v1686_v2  ;;  %1535 = vmatpush3.bf16.msra.mxu1 %v1608_v35 }
 0xb1b   : > { %1536 = vmatprep.subr.bf16.mxu1 %v1686_v2  ;;  %v1411_v2 = vld [vmem:[#allocation2] ss:$0 sm:$0xff] }
 0xb1e   : > { %1537 = vmatpush3.bf16.msra.mxu1 %v1609_v36 }
 0xbec   : > { %v1202_v40 = vpop.f32.mrb[20].mxu1 }
 0xbed   : > { %v1203_v41 = vadd.f32 %v1407_v39, %v1202_v40  ;;  %v1532_v42 = vpop.f32.mrb[21].mxu1 }
 0xbee   : > { %v1205_v43 = vpop.f32.mrb[22].mxu1 }
 0xbef   : > { %v1208_v44 = vmax.f32 %v1203_v41, 0.0  ;;  %v1533_v45 = vpop.f32.mrb[23].mxu1 }
 0xbf1   : > { %v1209_v10 = vpack.c.bf16 %v1208_v44, %v1208_v44 }
 0xbf3   : > { %1539 = vmatmul.mubr.msk.bf16.vlgmr.msra.gmra.mrb[24].mxu1 %vm543_vm2, %v1209_v10 }
 0xcc6   : > { %v1270_v46 = vpop.f32.mrb[24].mxu1 }
 0xcc7   : > { %v1271_v47 = vadd.f32 %v1411_v2, %v1270_v46  ;;  %v1540_v48 = vpop.f32.mrb[25].mxu1 }
 0xcc8   : > { %v1273_v49 = vpop.f32.mrb[26].mxu1 }
 0xcc9   : > { %1278 = vperm.xlu1 %1589, %v1271_v47   ;;  %v1541_v50 = vpop.f32.mrb[27].mxu1 }
 0xd48   : > { %v1279_v52 = vpop.permute.xlu1 %1278 }
 0xd49   : > { %v1283_v53 = vrot.slane %v1279_v52, %v1282_v51 }
 0xd4b   : > { %1286 = vst.msk [vmem:[%s445_s21] sm:$0x1] %vm1285_vm7, %v1283_v53 }
 0xd4c   : > { %1635 = shalt.err (!%p1632_p3)
}
 0xd4d   : > { %s1636_s14 = scalar_lea.hbm %s2012_s17, 16  ;;  %s1640_s25 = scalar_lea.hbm %s2067_s13, 32 }
 0xd4e   : > { %p1637_p4 = scmp.ne.s32.totalorder %s2012_s17, %s1636_s14  ;;  %p1641_p9 = scmp.lt.u32.totalorder %s2012_s17, %s2067_s13 }
 0xd4f   : > { %p1642_p10 = scmp.lt.u32.totalorder %s1640_s25, %s1636_s14  ;;  %p1644_p12 = scmp.lt.u32.totalorder %s1636_s14, %s2012_s17 }
 0xd50   : > { %p1638_p7 = pnand %p1637_p4, %p1806_p5 }
 0xd51   : > { %p1643_p11 = por %p1642_p10, %p1641_p9 }
 0xd52   : > { %p1639_p8 = pneg %p1638_p7 }
 0xd53   : > { %p1645_p13 = por %p1644_p12, %p1643_p11 }
 0xd55   : > { %p1646_p0 = pnand %p1645_p13, %p1639_p8 }
 0xd57   : > { %1649 = shalt.err (!%p1646_p0)
}
 0xd58   : > { %1542 = dma.vmem_to_hbm [thread:$0]  (%p1806_p5), %s2014_s22, 16, %s2012_s17, %s1288_s24  }
 0xd59 PF: > { %p1548_p1 = scmp.ge.s32.totalorder %s1684_s30, 2  ;;  %s1312_s1 = sand.u32 1, %s1672_s27  }
 0xd5a   : > { %s1313_s26 = scalar_lea.sflag [#allocation4], %s1312_s1 }
 0xd5b   : > { %p1545_p2 = pnand %p1548_p1, %p1810_p6 }
 0xd5d   : > { %1667 = dma.done.wait (!%p1545_p2), %s1313_s26, 16  }
 0xd5e   : > { %1669 = vsyncadd (!%p1545_p2), %s1313_s26, 4294967280  ;;  %p25_p3 = scmp.ge.s32.totalorder %s1793_s15, 4   ;;  %s2074_s27 = smov %s1676_s28 }
 0xd5f   : > { %s2075_s28 = smov %s1680_s29  ;;  %s2076_s29 = smov %s1804_s18 }
 0xd60   : > { %s2077_s30 = smov %s1793_s15  ;;  %27 = sbr.rel (!%p25_p3) target bundleno = 6 (0x6), region = 110 }
 0xd67   :  { %1317 = vsyncpa [#allocation4], 1 }
 0xd68   :  { %1319 = vsyncpa [#allocation4 + $0x1], 1 }

</bundles_post_ra>
